<compile_context>
chip_gen: v6e
topology: v6e:2x2x1
jax: 0.10.0
libtpu: 0.0.40
codegen_flags: <defaults>
</compile_context>

<pallas_src>
import math
import functools

import jax
import jax.numpy as jnp
from jax.experimental import pallas as pl
from jax.experimental.pallas import tpu as pltpu


# ----------------------------- tiling helpers ------------------------------

def _row_tile(n):
    if n <= 256:
        return n
    for t in (256, 128, 64, 32, 16, 8):
        if n % t == 0:
            return t
    return n


def _col_tile(n):
    if n <= 512:
        return n
    for t in (512, 256, 128):
        if n % t == 0:
            return t
    return n


def _seq_tile(s):
    if s <= 256:
        return s
    for t in (256, 128, 64, 32, 16, 8):
        if s % t == 0:
            return t
    return s


# ----------------------------- Pallas kernels ------------------------------

def _ln_qkv_kernel(x_ref, g_ref, b_ref, w_ref, bias_ref, oq_ref, ok_ref, ov_ref):
    """Fused LayerNorm + QKV projection (one matmul against concatenated (D, 3D) weight)."""
    x = x_ref[...].astype(jnp.float32)
    mean = jnp.mean(x, axis=-1, keepdims=True)
    var = jnp.mean((x - mean) ** 2, axis=-1, keepdims=True)
    h = (x - mean) * jax.lax.rsqrt(var + 1e-5) * g_ref[...] + b_ref[...]
    acc = jnp.dot(h.astype(jnp.bfloat16), w_ref[...],
                  preferred_element_type=jnp.float32)
    acc = acc + bias_ref[...]
    d = oq_ref.shape[-1]
    oq_ref[...] = acc[:, 0:d].astype(oq_ref.dtype)
    ok_ref[...] = acc[:, d:2 * d].astype(ok_ref.dtype)
    ov_ref[...] = acc[:, 2 * d:3 * d].astype(ov_ref.dtype)


def _flash_attn_kernel(q_ref, k_ref, v_ref, cq_ref, sq_ref, ck_ref, sk_ref,
                       o_ref, m_sc, l_sc, acc_sc, *, num_heads):
    """Flash-style causal attention with in-kernel RoPE, lane-dense (1, tq, H*Dh) blocks."""
    H = num_heads
    qi = pl.program_id(1)
    kv = pl.program_id(2)
    tq = q_ref.shape[1]
    tk = k_ref.shape[1]
    D = q_ref.shape[2]
    Dh = D // H
    half = Dh // 2

    @pl.when(kv == 0)
    def _init():
        m_sc[...] = jnp.full_like(m_sc, -1e30)
        l_sc[...] = jnp.zeros_like(l_sc)
        acc_sc[...] = jnp.zeros_like(acc_sc)

    # Skip kv tiles that lie entirely above the causal diagonal.
    @pl.when(kv * tk <= qi * tq + tq - 1)
    def _compute():
        # RoPE tables: sign and 1/sqrt(Dh) scale already folded in on the q side.
        cq = cq_ref[...]
        sq = sq_ref[...]
        ck = ck_ref[...]
        sk = sk_ref[...]

        row = qi * tq + jax.lax.broadcasted_iota(jnp.int32, (tq, tk), 0)
        col = kv * tk + jax.lax.broadcasted_iota(jnp.int32, (tq, tk), 1)
        causal = col <= row

        q_all = q_ref[0].astype(jnp.float32)        # (tq, D)
        k_all = k_ref[0].astype(jnp.float32)        # (tk, D)
        v_all = v_ref[0]                            # (tk, D)

        # TODO(synk): RoPE class source not given; assuming NeoX-style rotate-half rotary embedding.
        def rope(t, c, s):
            t1 = t[:, :half]
            t2 = t[:, half:]
            rot = jnp.concatenate([t2, t1], axis=-1)   # sign folded into s
            return t * c + rot * s

        for h in range(H):
            lo = h * Dh
            qh = rope(q_all[:, lo:lo + Dh], cq, sq).astype(jnp.bfloat16)
            kh = rope(k_all[:, lo:lo + Dh], ck, sk).astype(jnp.bfloat16)
            vh = v_all[:, lo:lo + Dh].astype(jnp.bfloat16)

            s_hk = jnp.dot(qh, kh.T, preferred_element_type=jnp.float32)   # (tq, tk)
            s_hk = jnp.where(causal, s_hk, -1e30)

            m_prev = m_sc[h]                                               # (tq, 1)
            m_new = jnp.maximum(m_prev, jnp.max(s_hk, axis=-1, keepdims=True))
            alpha = jnp.exp(m_prev - m_new)
            p = jnp.exp(s_hk - m_new)
            l_sc[h] = alpha * l_sc[h] + jnp.sum(p, axis=-1, keepdims=True)
            acc_sc[h] = alpha * acc_sc[h] + jnp.dot(
                p.astype(jnp.bfloat16), vh, preferred_element_type=jnp.float32)
            m_sc[h] = m_new

    @pl.when(kv == pl.num_programs(2) - 1)
    def _finalize():
        outs = []
        for h in range(H):
            inv = pl.reciprocal(l_sc[h], approx=True)
            outs.append(acc_sc[h] * inv)
        o_ref[0] = jnp.concatenate(outs, axis=-1).astype(o_ref.dtype)


def _proj_mlp_kernel(y_ref, x_ref, wc_ref, g_ref, b_ref,
                     w1_ref, b1_ref, w3_ref, b3_ref, w2_ref, b2_ref, o_ref):
    """Fused c_proj + residual-add + LayerNorm + gated-GELU MLP + residual-add."""
    x = x_ref[...].astype(jnp.float32)
    attn = jnp.dot(y_ref[...].astype(jnp.bfloat16), wc_ref[...],
                   preferred_element_type=jnp.float32)        # c_proj (no bias)
    x = x + attn                                              # residual 1

    mean = jnp.mean(x, axis=-1, keepdims=True)
    var = jnp.mean((x - mean) ** 2, axis=-1, keepdims=True)
    h = (x - mean) * jax.lax.rsqrt(var + 1e-5) * g_ref[...] + b_ref[...]
    hb = h.astype(jnp.bfloat16)

    h1 = jnp.dot(hb, w1_ref[...], preferred_element_type=jnp.float32) + b1_ref[...]
    h3 = jnp.dot(hb, w3_ref[...], preferred_element_type=jnp.float32) + b3_ref[...]
    # gelu(approximate='tanh') in f32
    c = math.sqrt(2.0 / math.pi)
    gelu = 0.5 * h1 * (1.0 + jnp.tanh(c * (h1 + 0.044715 * h1 * h1 * h1)))
    gated = (gelu * h3).astype(jnp.bfloat16)

    mlp = jnp.dot(gated, w2_ref[...], preferred_element_type=jnp.float32) + b2_ref[...]
    o_ref[...] = (x + mlp).astype(o_ref.dtype)                # residual 2


def _ln_head_kernel(x_ref, g_ref, b_ref, w_ref, o_ref):
    """Fused final LayerNorm + lm_head projection (vocab-tiled)."""
    x = x_ref[...].astype(jnp.float32)
    mean = jnp.mean(x, axis=-1, keepdims=True)
    var = jnp.mean((x - mean) ** 2, axis=-1, keepdims=True)
    h = ((x - mean) * jax.lax.rsqrt(var + 1e-5) * g_ref[...] + b_ref[...]).astype(jnp.bfloat16)
    o_ref[...] = jnp.dot(h, w_ref[...],
                         preferred_element_type=jnp.float32).astype(o_ref.dtype)


# ----------------------------- kernel wrappers ------------------------------

def pallas_ln_qkv(x, g, b, wqkv, bqkv):
    n, d = x.shape
    d3 = wqkv.shape[1]
    tm = _row_tile(n)
    grid = (n // tm,)
    out = pl.pallas_call(
        _ln_qkv_kernel,
        grid=grid,
        in_specs=[
            pl.BlockSpec((tm, d), lambda i: (i, 0)),
            pl.BlockSpec((1, d), lambda i: (0, 0)),
            pl.BlockSpec((1, d), lambda i: (0, 0)),
            pl.BlockSpec((d, d3), lambda i: (0, 0)),
            pl.BlockSpec((1, d3), lambda i: (0, 0)),
        ],
        out_specs=tuple(pl.BlockSpec((tm, d), lambda i: (i, 0)) for _ in range(3)),
        out_shape=tuple(jax.ShapeDtypeStruct((n, d), jnp.float32) for _ in range(3)),
        compiler_params=pltpu.CompilerParams(
            dimension_semantics=("parallel",),
            vmem_limit_bytes=32 * 1024 * 1024),
    )(x, g, b, wqkv, bqkv)
    return out  # (q, k, v)


def pallas_flash_attention(q, k, v, cos_q, sin_q, cos_k, sin_k, num_heads):
    B, S, D = q.shape
    Dh = D // num_heads
    tq = _seq_tile(S)
    tk = tq
    grid = (B, S // tq, S // tk)

    q_spec = pl.BlockSpec((1, tq, D), lambda b, qi, kv: (b, qi, 0))
    kv_spec = pl.BlockSpec((1, tk, D), lambda b, qi, kv: (b, kv, 0))
    cq_spec = pl.BlockSpec((tq, Dh), lambda b, qi, kv: (qi, 0))
    ck_spec = pl.BlockSpec((tk, Dh), lambda b, qi, kv: (kv, 0))

    kernel = functools.partial(_flash_attn_kernel, num_heads=num_heads)
    return pl.pallas_call(
        kernel,
        grid=grid,
        in_specs=[q_spec, kv_spec, kv_spec, cq_spec, cq_spec, ck_spec, ck_spec],
        out_specs=pl.BlockSpec((1, tq, D), lambda b, qi, kv: (b, qi, 0)),
        out_shape=jax.ShapeDtypeStruct((B, S, D), jnp.float32),
        scratch_shapes=[
            pltpu.VMEM((num_heads, tq, 1), jnp.float32),    # running max m
            pltpu.VMEM((num_heads, tq, 1), jnp.float32),    # running sum l
            pltpu.VMEM((num_heads, tq, Dh), jnp.float32),   # accumulator
        ],
        compiler_params=pltpu.CompilerParams(
            dimension_semantics=("parallel", "parallel", "arbitrary"),
            vmem_limit_bytes=32 * 1024 * 1024),
    )(q, k, v, cos_q, sin_q, cos_k, sin_k)


def pallas_proj_mlp(y, x, wc, g, b, w1, b1, w3, b3, w2, b2):
    n, d = x.shape
    inter = w1.shape[1]
    tm = _row_tile(n)
    grid = (n // tm,)
    row = lambda i: (i, 0)
    full = lambda i: (0, 0)
    return pl.pallas_call(
        _proj_mlp_kernel,
        grid=grid,
        in_specs=[
            pl.BlockSpec((tm, d), row),        # y (attention output)
            pl.BlockSpec((tm, d), row),        # x (residual stream)
            pl.BlockSpec((d, d), full),        # c_proj weight
            pl.BlockSpec((1, d), full),        # mlp_norm gamma
            pl.BlockSpec((1, d), full),        # mlp_norm beta
            pl.BlockSpec((d, inter), full),    # w1
            pl.BlockSpec((1, inter), full),    # b1
            pl.BlockSpec((d, inter), full),    # w3
            pl.BlockSpec((1, inter), full),    # b3
            pl.BlockSpec((inter, d), full),    # w2
            pl.BlockSpec((1, d), full),        # b2
        ],
        out_specs=pl.BlockSpec((tm, d), row),
        out_shape=jax.ShapeDtypeStruct((n, d), jnp.float32),
        compiler_params=pltpu.CompilerParams(
            dimension_semantics=("parallel",),
            vmem_limit_bytes=32 * 1024 * 1024),
    )(y, x, wc, g, b, w1, b1, w3, b3, w2, b2)


def pallas_ln_head(x, g, b, w):
    n, d = x.shape
    vocab = w.shape[1]
    tm = _row_tile(n)
    tv = _col_tile(vocab)
    grid = (n // tm, vocab // tv)
    return pl.pallas_call(
        _ln_head_kernel,
        grid=grid,
        in_specs=[
            pl.BlockSpec((tm, d), lambda i, j: (i, 0)),
            pl.BlockSpec((1, d), lambda i, j: (0, 0)),
            pl.BlockSpec((1, d), lambda i, j: (0, 0)),
            pl.BlockSpec((d, tv), lambda i, j: (0, j)),
        ],
        out_specs=pl.BlockSpec((tm, tv), lambda i, j: (i, j)),
        out_shape=jax.ShapeDtypeStruct((n, vocab), jnp.float32),
        compiler_params=pltpu.CompilerParams(
            dimension_semantics=("parallel", "parallel"),
            vmem_limit_bytes=32 * 1024 * 1024),
    )(x, g, b, w)


# ----------------------------- model ------------------------------

def make_config():
    return dict(
        dim=32,
        num_heads=4,
        num_layers=2,
        mlp_scale=4,
        vocab_size=64,
        seq_len=8,
        rope_theta=10000.0,
        bias=False,          # c_proj / lm_head have no bias
        dropout=0.0,
        weight_tying=False,
    )


def init_params(key, cfg):
    D = cfg["dim"]
    I = cfg["mlp_scale"] * D
    V = cfg["vocab_size"]
    L = cfg["num_layers"]
    std = D ** (-0.5)
    scaled_std = std * (2 * L) ** (-0.5)

    keys = iter(jax.random.split(key, 2 + 7 * L))

    def nrm(shape, s):
        return s * jax.random.normal(next(keys), shape, dtype=jnp.float32)

    params = {"tok_emb": nrm((V, D), std)}
    layers = []
    for _ in range(L):
        wq = nrm((D, D), std)
        wk = nrm((D, D), std)
        wv = nrm((D, D), std)
        layers.append(dict(
            ln1_g=jnp.ones((1, D), jnp.float32),
            ln1_b=jnp.zeros((1, D), jnp.float32),
            wqkv=jnp.concatenate([wq, wk, wv], axis=1).astype(jnp.bfloat16),  # (D, 3D) bf16
            bqkv=jnp.zeros((1, 3 * D), jnp.float32),
            c_proj=nrm((D, D), scaled_std).astype(jnp.bfloat16),              # SCALE_INIT, no bias
            ln2_g=jnp.ones((1, D), jnp.float32),
            ln2_b=jnp.zeros((1, D), jnp.float32),
            w1=nrm((D, I), std).astype(jnp.bfloat16),
            b1=jnp.zeros((1, I), jnp.float32),
            w3=nrm((D, I), std).astype(jnp.bfloat16),
            b3=jnp.zeros((1, I), jnp.float32),
            w2=nrm((I, D), scaled_std).astype(jnp.bfloat16),                  # SCALE_INIT
            b2=jnp.zeros((1, D), jnp.float32),
        ))
    params["layers"] = layers
    params["out_norm_g"] = jnp.ones((1, D), jnp.float32)
    params["out_norm_b"] = jnp.zeros((1, D), jnp.float32)
    params["lm_head"] = nrm((D, V), scaled_std).astype(jnp.bfloat16)          # SCALE_INIT, no bias
    return params


def rope_tables(seq_len, head_dim, theta):
    """cos table and sign-folded sin table for rotate-half RoPE (NeoX style)."""
    inv_freq = 1.0 / (theta ** (jnp.arange(0, head_dim, 2, dtype=jnp.float32) / head_dim))
    pos = jnp.arange(seq_len, dtype=jnp.float32)
    ang = pos[:, None] * inv_freq[None, :]                       # (S, Dh/2)
    cos = jnp.concatenate([jnp.cos(ang), jnp.cos(ang)], axis=-1)  # (S, Dh)
    sin = jnp.sin(ang)
    sin_signed = jnp.concatenate([-sin, sin], axis=-1)            # sign of rotate-half folded in
    return cos.astype(jnp.float32), sin_signed.astype(jnp.float32)


def transformer_forward(params, tokens, cfg):
    B, S = tokens.shape
    D = cfg["dim"]
    H = cfg["num_heads"]
    Dh = D // H
    N = B * S

    cos, sin_signed = rope_tables(S, Dh, cfg["rope_theta"])
    scale = 1.0 / math.sqrt(Dh)
    cos_q, sin_q = cos * scale, sin_signed * scale   # fold 1/sqrt(Dh) into the q-side tables
    cos_k, sin_k = cos, sin_signed

    x = params["tok_emb"][tokens].reshape(N, D)      # embedding gather (glue)
    # dropout(p=0) in eval mode -> identity

    for lp in params["layers"]:
        # fused LN + QKV projection (one launch, single concatenated matmul)
        q, k, v = pallas_ln_qkv(x, lp["ln1_g"], lp["ln1_b"], lp["wqkv"], lp["bqkv"])

        # flash attention with in-kernel RoPE, lane-dense per-batch blocks
        y = pallas_flash_attention(
            q.reshape(B, S, D), k.reshape(B, S, D), v.reshape(B, S, D),
            cos_q, sin_q, cos_k, sin_k, H)

        # fused c_proj + residual + LN + gated-GELU MLP + residual
        x = pallas_proj_mlp(
            y.reshape(N, D), x, lp["c_proj"], lp["ln2_g"], lp["ln2_b"],
            lp["w1"], lp["b1"], lp["w3"], lp["b3"], lp["w2"], lp["b2"])

    logits = pallas_ln_head(x, params["out_norm_g"], params["out_norm_b"], params["lm_head"])
    return logits.reshape(B, S, cfg["vocab_size"])


# ----------------------------- main ------------------------------

if __name__ == "__main__":
    cfg = make_config()
    key = jax.random.PRNGKey(0)
    pkey, dkey = jax.random.split(key)

    params = init_params(pkey, cfg)

    B, S = 2, cfg["seq_len"]
    tokens = jax.random.randint(dkey, (B, S), 0, cfg["vocab_size"], dtype=jnp.int32)

    fwd = jax.jit(lambda p, t: transformer_forward(p, t, cfg))
    out = fwd(params, tokens)
    jax.block_until_ready(out)

    assert out.shape == (B, S, cfg["vocab_size"]), out.shape
    assert out.dtype == jnp.float32
    assert bool(jnp.all(jnp.isfinite(out)))
    print("KERNEL_OK")
</pallas_src>

<mosaic_0001>
module attributes {stable_mosaic.version = 11 : i64} {
  func.func @_ln_qkv_kernel(%arg0: i32, %arg1: memref<16x32xf32, #tpu.memory_space<vmem>>, %arg2: memref<1x32xf32, #tpu.memory_space<vmem>>, %arg3: memref<1x32xf32, #tpu.memory_space<vmem>>, %arg4: memref<32x96xbf16, #tpu.memory_space<vmem>>, %arg5: memref<1x96xf32, #tpu.memory_space<vmem>>, %arg6: memref<16x32xf32, #tpu.memory_space<vmem>>, %arg7: memref<16x32xf32, #tpu.memory_space<vmem>>, %arg8: memref<16x32xf32, #tpu.memory_space<vmem>>) attributes {dimension_semantics = [#tpu.dimension_semantics<parallel>], iteration_bounds = array<i64: 1>, scalar_prefetch = 0 : i64, scratch_operands = 0 : i64, tpu.core_type = #tpu.core_type<tc>, window_params = [{transform_indices = @transform_0, window_bounds = array<i64: 16, 32>}, {pipeline_mode = #tpu.pipeline_mode<synchronous>, transform_indices = @transform_1, window_bounds = array<i64: 1, 32>}, {pipeline_mode = #tpu.pipeline_mode<synchronous>, transform_indices = @transform_2, window_bounds = array<i64: 1, 32>}, {pipeline_mode = #tpu.pipeline_mode<synchronous>, transform_indices = @transform_3, window_bounds = array<i64: 32, 96>}, {pipeline_mode = #tpu.pipeline_mode<synchronous>, transform_indices = @transform_4, window_bounds = array<i64: 1, 96>}, {transform_indices = @transform_5, window_bounds = array<i64: 16, 32>}, {transform_indices = @transform_6, window_bounds = array<i64: 16, 32>}, {transform_indices = @transform_7, window_bounds = array<i64: 16, 32>}]} {
    %c0 = arith.constant 0 : index
    %c0_0 = arith.constant 0 : index
    %0 = vector.load %arg1[%c0, %c0_0] : memref<16x32xf32, #tpu.memory_space<vmem>>, vector<16x32xf32>
    %cst = arith.constant dense<0.000000e+00> : vector<16xf32>
    %1 = vector.multi_reduction <add>, %0, %cst [1] : vector<16x32xf32> to vector<16xf32>
    %2 = vector.shape_cast %1 : vector<16xf32> to vector<16x1xf32>
    %cst_1 = arith.constant 3.200000e+01 : f32
    %3 = vector.broadcast %cst_1 : f32 to vector<16x1xf32>
    %4 = arith.divf %2, %3 : vector<16x1xf32>
    %5 = vector.broadcast %4 : vector<16x1xf32> to vector<16x32xf32>
    %6 = arith.subf %0, %5 : vector<16x32xf32>
    %7 = arith.mulf %6, %6 : vector<16x32xf32>
    %cst_2 = arith.constant dense<0.000000e+00> : vector<16xf32>
    %8 = vector.multi_reduction <add>, %7, %cst_2 [1] : vector<16x32xf32> to vector<16xf32>
    %9 = vector.shape_cast %8 : vector<16xf32> to vector<16x1xf32>
    %cst_3 = arith.constant 3.200000e+01 : f32
    %10 = vector.broadcast %cst_3 : f32 to vector<16x1xf32>
    %11 = arith.divf %9, %10 : vector<16x1xf32>
    %12 = vector.broadcast %4 : vector<16x1xf32> to vector<16x32xf32>
    %13 = arith.subf %0, %12 : vector<16x32xf32>
    %cst_4 = arith.constant 9.99999974E-6 : f32
    %14 = vector.broadcast %cst_4 : f32 to vector<16x1xf32>
    %15 = arith.addf %11, %14 : vector<16x1xf32>
    %16 = math.rsqrt %15 : vector<16x1xf32>
    %17 = vector.broadcast %16 : vector<16x1xf32> to vector<16x32xf32>
    %18 = arith.mulf %13, %17 : vector<16x32xf32>
    %c0_5 = arith.constant 0 : index
    %c0_6 = arith.constant 0 : index
    %19 = vector.load %arg2[%c0_5, %c0_6] : memref<1x32xf32, #tpu.memory_space<vmem>>, vector<1x32xf32>
    %20 = vector.broadcast %19 : vector<1x32xf32> to vector<16x32xf32>
    %21 = arith.mulf %18, %20 : vector<16x32xf32>
    %c0_7 = arith.constant 0 : index
    %c0_8 = arith.constant 0 : index
    %22 = vector.load %arg3[%c0_7, %c0_8] : memref<1x32xf32, #tpu.memory_space<vmem>>, vector<1x32xf32>
    %23 = vector.broadcast %22 : vector<1x32xf32> to vector<16x32xf32>
    %24 = arith.addf %21, %23 : vector<16x32xf32>
    %25 = arith.truncf %24 : vector<16x32xf32> to vector<16x32xbf16>
    %c0_9 = arith.constant 0 : index
    %c0_10 = arith.constant 0 : index
    %26 = vector.load %arg4[%c0_9, %c0_10] : memref<32x96xbf16, #tpu.memory_space<vmem>>, vector<32x96xbf16>
    %cst_11 = arith.constant dense<0.000000e+00> : vector<16x96xf32>
    %27 = tpu.matmul %25, %26, %cst_11 {dimension_numbers = #tpu.dot_dimension_numbers<[1], [0], [0], [1], [0, 0, 1, 1], [], []>} : vector<16x32xbf16>, vector<32x96xbf16>, vector<16x96xf32> -> vector<16x96xf32>
    %c0_12 = arith.constant 0 : index
    %c0_13 = arith.constant 0 : index
    %28 = vector.load %arg5[%c0_12, %c0_13] : memref<1x96xf32, #tpu.memory_space<vmem>>, vector<1x96xf32>
    %29 = vector.broadcast %28 : vector<1x96xf32> to vector<16x96xf32>
    %30 = arith.addf %27, %29 : vector<16x96xf32>
    %31 = vector.extract_strided_slice %30 {offsets = [0, 0], sizes = [16, 32], strides = [1, 1]} : vector<16x96xf32> to vector<16x32xf32>
    %c0_14 = arith.constant 0 : index
    %c0_15 = arith.constant 0 : index
    %32 = vector.load %arg6[%c0_14, %c0_15] : memref<16x32xf32, #tpu.memory_space<vmem>>, vector<16x32xf32>
    tpu.vector_store %arg6[%c0_14, %c0_15], %31 {strides = array<i32>} : memref<16x32xf32, #tpu.memory_space<vmem>>, vector<16x32xf32>,
    %33 = vector.extract_strided_slice %30 {offsets = [0, 32], sizes = [16, 32], strides = [1, 1]} : vector<16x96xf32> to vector<16x32xf32>
    %c0_16 = arith.constant 0 : index
    %c0_17 = arith.constant 0 : index
    %34 = vector.load %arg7[%c0_16, %c0_17] : memref<16x32xf32, #tpu.memory_space<vmem>>, vector<16x32xf32>
    tpu.vector_store %arg7[%c0_16, %c0_17], %33 {strides = array<i32>} : memref<16x32xf32, #tpu.memory_space<vmem>>, vector<16x32xf32>,
    %35 = vector.extract_strided_slice %30 {offsets = [0, 64], sizes = [16, 32], strides = [1, 1]} : vector<16x96xf32> to vector<16x32xf32>
    %c0_18 = arith.constant 0 : index
    %c0_19 = arith.constant 0 : index
    %36 = vector.load %arg8[%c0_18, %c0_19] : memref<16x32xf32, #tpu.memory_space<vmem>>, vector<16x32xf32>
    tpu.vector_store %arg8[%c0_18, %c0_19], %35 {strides = array<i32>} : memref<16x32xf32, #tpu.memory_space<vmem>>, vector<16x32xf32>,
    return
  }
  func.func @transform_0(%arg0: i32) -> (i32, i32) {
    %c0_i32 = arith.constant 0 : i32
    %c0_i32_0 = arith.constant 0 : i32
    return %arg0, %c0_i32 : i32, i32
  }
  func.func @transform_1(%arg0: i32) -> (i32, i32) {
    %c0_i32 = arith.constant 0 : i32
    %c0_i32_0 = arith.constant 0 : i32
    %c0_i32_1 = arith.constant 0 : i32
    return %c0_i32, %c0_i32_0 : i32, i32
  }
  func.func @transform_2(%arg0: i32) -> (i32, i32) {
    %c0_i32 = arith.constant 0 : i32
    %c0_i32_0 = arith.constant 0 : i32
    %c0_i32_1 = arith.constant 0 : i32
    return %c0_i32, %c0_i32_0 : i32, i32
  }
  func.func @transform_3(%arg0: i32) -> (i32, i32) {
    %c0_i32 = arith.constant 0 : i32
    %c0_i32_0 = arith.constant 0 : i32
    %c0_i32_1 = arith.constant 0 : i32
    return %c0_i32, %c0_i32_0 : i32, i32
  }
  func.func @transform_4(%arg0: i32) -> (i32, i32) {
    %c0_i32 = arith.constant 0 : i32
    %c0_i32_0 = arith.constant 0 : i32
    %c0_i32_1 = arith.constant 0 : i32
    return %c0_i32, %c0_i32_0 : i32, i32
  }
  func.func @transform_5(%arg0: i32) -> (i32, i32) {
    %c0_i32 = arith.constant 0 : i32
    %c0_i32_0 = arith.constant 0 : i32
    return %arg0, %c0_i32 : i32, i32
  }
  func.func @transform_6(%arg0: i32) -> (i32, i32) {
    %c0_i32 = arith.constant 0 : i32
    %c0_i32_0 = arith.constant 0 : i32
    return %arg0, %c0_i32 : i32, i32
  }
  func.func @transform_7(%arg0: i32) -> (i32, i32) {
    %c0_i32 = arith.constant 0 : i32
    %c0_i32_0 = arith.constant 0 : i32
    return %arg0, %c0_i32 : i32, i32
  }
}

module attributes {stable_mosaic.version = 11 : i64} {
  func.func @_flash_attn_kernel(%arg0: i32, %arg1: i32, %arg2: i32, %arg3: memref<1x8x32xf32, #tpu.memory_space<vmem>>, %arg4: memref<1x8x32xf32, #tpu.memory_space<vmem>>, %arg5: memref<1x8x32xf32, #tpu.memory_space<vmem>>, %arg6: memref<8x8xf32, #tpu.memory_space<vmem>>, %arg7: memref<8x8xf32, #tpu.memory_space<vmem>>, %arg8: memref<8x8xf32, #tpu.memory_space<vmem>>, %arg9: memref<8x8xf32, #tpu.memory_space<vmem>>, %arg10: memref<1x8x32xf32, #tpu.memory_space<vmem>>, %arg11: memref<4x8x1xf32, #tpu.memory_space<vmem>>, %arg12: memref<4x8x1xf32, #tpu.memory_space<vmem>>, %arg13: memref<4x8x8xf32, #tpu.memory_space<vmem>>) attributes {dimension_semantics = [#tpu.dimension_semantics<parallel>, #tpu.dimension_semantics<parallel>, #tpu.dimension_semantics<arbitrary>], iteration_bounds = array<i64: 2, 1, 1>, scalar_prefetch = 0 : i64, scratch_operands = 3 : i64, tpu.core_type = #tpu.core_type<tc>, window_params = [{transform_indices = @transform_0, window_bounds = array<i64: 1, 8, 32>}, {transform_indices = @transform_1, window_bounds = array<i64: 1, 8, 32>}, {transform_indices = @transform_2, window_bounds = array<i64: 1, 8, 32>}, {transform_indices = @transform_3, window_bounds = array<i64: 8, 8>}, {transform_indices = @transform_4, window_bounds = array<i64: 8, 8>}, {transform_indices = @transform_5, window_bounds = array<i64: 8, 8>}, {transform_indices = @transform_6, window_bounds = array<i64: 8, 8>}, {transform_indices = @transform_7, window_bounds = array<i64: 1, 8, 32>}]} {
    %c0_i32 = arith.constant 0 : i32
    %0 = arith.cmpi eq, %arg2, %c0_i32 : i32
    %1 = arith.extui %0 : i1 to i32
    %c0_i32_0 = arith.constant 0 : i32
    %2 = arith.cmpi ne, %1, %c0_i32_0 : i32
    scf.if %2 {
      %cst = arith.constant -1.000000e+30 : f32
      %13 = vector.broadcast %cst : f32 to vector<4x8x1xf32>
      %c0 = arith.constant 0 : index
      %c0_6 = arith.constant 0 : index
      %c0_7 = arith.constant 0 : index
      %14 = vector.load %arg11[%c0, %c0_6, %c0_7] : memref<4x8x1xf32, #tpu.memory_space<vmem>>, vector<4x8x1xf32>
      tpu.vector_store %arg11[%c0, %c0_6, %c0_7], %13 {strides = array<i32>} : memref<4x8x1xf32, #tpu.memory_space<vmem>>, vector<4x8x1xf32>,
      %cst_8 = arith.constant 0.000000e+00 : f32
      %15 = vector.broadcast %cst_8 : f32 to vector<4x8x1xf32>
      %c0_9 = arith.constant 0 : index
      %c0_10 = arith.constant 0 : index
      %c0_11 = arith.constant 0 : index
      %16 = vector.load %arg12[%c0_9, %c0_10, %c0_11] : memref<4x8x1xf32, #tpu.memory_space<vmem>>, vector<4x8x1xf32>
      tpu.vector_store %arg12[%c0_9, %c0_10, %c0_11], %15 {strides = array<i32>} : memref<4x8x1xf32, #tpu.memory_space<vmem>>, vector<4x8x1xf32>,
      %cst_12 = arith.constant 0.000000e+00 : f32
      %17 = vector.broadcast %cst_12 : f32 to vector<4x8x8xf32>
      %c0_13 = arith.constant 0 : index
      %c0_14 = arith.constant 0 : index
      %c0_15 = arith.constant 0 : index
      %18 = vector.load %arg13[%c0_13, %c0_14, %c0_15] : memref<4x8x8xf32, #tpu.memory_space<vmem>>, vector<4x8x8xf32>
      tpu.vector_store %arg13[%c0_13, %c0_14, %c0_15], %17 {strides = array<i32>} : memref<4x8x8xf32, #tpu.memory_space<vmem>>, vector<4x8x8xf32>,
    } else {
    }
    %c8_i32 = arith.constant 8 : i32
    %3 = arith.muli %arg2, %c8_i32 : i32
    %c8_i32_1 = arith.constant 8 : i32
    %4 = arith.muli %arg1, %c8_i32_1 : i32
    %c8_i32_2 = arith.constant 8 : i32
    %5 = arith.addi %4, %c8_i32_2 : i32
    %c1_i32 = arith.constant 1 : i32
    %6 = arith.subi %5, %c1_i32 : i32
    %7 = arith.cmpi sle, %3, %6 : i32
    %8 = arith.extui %7 : i1 to i32
    %c0_i32_3 = arith.constant 0 : i32
    %9 = arith.cmpi ne, %8, %c0_i32_3 : i32
    scf.if %9 {
      %c0 = arith.constant 0 : index
      %c0_6 = arith.constant 0 : index
      %13 = vector.load %arg6[%c0, %c0_6] : memref<8x8xf32, #tpu.memory_space<vmem>>, vector<8x8xf32>
      %c0_7 = arith.constant 0 : index
      %c0_8 = arith.constant 0 : index
      %14 = vector.load %arg7[%c0_7, %c0_8] : memref<8x8xf32, #tpu.memory_space<vmem>>, vector<8x8xf32>
      %c0_9 = arith.constant 0 : index
      %c0_10 = arith.constant 0 : index
      %15 = vector.load %arg8[%c0_9, %c0_10] : memref<8x8xf32, #tpu.memory_space<vmem>>, vector<8x8xf32>
      %c0_11 = arith.constant 0 : index
      %c0_12 = arith.constant 0 : index
      %16 = vector.load %arg9[%c0_11, %c0_12] : memref<8x8xf32, #tpu.memory_space<vmem>>, vector<8x8xf32>
      %c8_i32_13 = arith.constant 8 : i32
      %17 = arith.muli %arg1, %c8_i32_13 : i32
      %18 = tpu.iota {dimensions = array<i32: 0>} : vector<8x8xi32>
      %19 = vector.broadcast %17 : i32 to vector<8x8xi32>
      %20 = arith.addi %19, %18 : vector<8x8xi32>
      %c8_i32_14 = arith.constant 8 : i32
      %21 = arith.muli %arg2, %c8_i32_14 : i32
      %22 = tpu.iota {dimensions = array<i32: 1>} : vector<8x8xi32>
      %23 = vector.broadcast %21 : i32 to vector<8x8xi32>
      %24 = arith.addi %23, %22 : vector<8x8xi32>
      %25 = arith.cmpi sle, %24, %20 : vector<8x8xi32>
      %c0_15 = arith.constant 0 : index
      %c0_16 = arith.constant 0 : index
      %c0_17 = arith.constant 0 : index
      %26 = vector.load %arg3[%c0_15, %c0_16, %c0_17] : memref<1x8x32xf32, #tpu.memory_space<vmem>>, vector<1x8x32xf32>
      %27 = vector.shape_cast %26 : vector<1x8x32xf32> to vector<8x32xf32>
      %c0_18 = arith.constant 0 : index
      %c0_19 = arith.constant 0 : index
      %c0_20 = arith.constant 0 : index
      %28 = vector.load %arg4[%c0_18, %c0_19, %c0_20] : memref<1x8x32xf32, #tpu.memory_space<vmem>>, vector<1x8x32xf32>
      %29 = vector.shape_cast %28 : vector<1x8x32xf32> to vector<8x32xf32>
      %c0_21 = arith.constant 0 : index
      %c0_22 = arith.constant 0 : index
      %c0_23 = arith.constant 0 : index
      %30 = vector.load %arg5[%c0_21, %c0_22, %c0_23] : memref<1x8x32xf32, #tpu.memory_space<vmem>>, vector<1x8x32xf32>
      %31 = vector.shape_cast %30 : vector<1x8x32xf32> to vector<8x32xf32>
      %32 = vector.extract_strided_slice %27 {offsets = [0, 0], sizes = [8, 8], strides = [1, 1]} : vector<8x32xf32> to vector<8x8xf32>
      %33 = vector.extract_strided_slice %32 {offsets = [0, 0], sizes = [8, 4], strides = [1, 1]} : vector<8x8xf32> to vector<8x4xf32>
      %34 = vector.extract_strided_slice %32 {offsets = [0, 4], sizes = [8, 4], strides = [1, 1]} : vector<8x8xf32> to vector<8x4xf32>
      %35 = tpu.concatenate %34, %33 in 1 : vector<8x4xf32>, vector<8x4xf32> -> vector<8x8xf32>
      %36 = arith.mulf %32, %13 : vector<8x8xf32>
      %37 = arith.mulf %35, %14 : vector<8x8xf32>
      %38 = arith.addf %36, %37 : vector<8x8xf32>
      %39 = arith.truncf %38 : vector<8x8xf32> to vector<8x8xbf16>
      %40 = vector.extract_strided_slice %29 {offsets = [0, 0], sizes = [8, 8], strides = [1, 1]} : vector<8x32xf32> to vector<8x8xf32>
      %41 = vector.extract_strided_slice %40 {offsets = [0, 0], sizes = [8, 4], strides = [1, 1]} : vector<8x8xf32> to vector<8x4xf32>
      %42 = vector.extract_strided_slice %40 {offsets = [0, 4], sizes = [8, 4], strides = [1, 1]} : vector<8x8xf32> to vector<8x4xf32>
      %43 = tpu.concatenate %42, %41 in 1 : vector<8x4xf32>, vector<8x4xf32> -> vector<8x8xf32>
      %44 = arith.mulf %40, %15 : vector<8x8xf32>
      %45 = arith.mulf %43, %16 : vector<8x8xf32>
      %46 = arith.addf %44, %45 : vector<8x8xf32>
      %47 = arith.truncf %46 : vector<8x8xf32> to vector<8x8xbf16>
      %48 = vector.extract_strided_slice %31 {offsets = [0, 0], sizes = [8, 8], strides = [1, 1]} : vector<8x32xf32> to vector<8x8xf32>
      %49 = arith.truncf %48 : vector<8x8xf32> to vector<8x8xbf16>
      %50 = tpu.transpose %47, [1, 0] : vector<8x8xbf16> -> vector<8x8xbf16>
      %cst = arith.constant dense<0.000000e+00> : vector<8x8xf32>
      %51 = tpu.matmul %39, %50, %cst {dimension_numbers = #tpu.dot_dimension_numbers<[1], [0], [0], [1], [0, 0, 1, 1], [], []>} : vector<8x8xbf16>, vector<8x8xbf16>, vector<8x8xf32> -> vector<8x8xf32>
      %cst_24 = arith.constant -1.000000e+30 : f32
      %52 = vector.broadcast %cst_24 : f32 to vector<8x8xf32>
      %53 = arith.select %25, %51, %52 : vector<8x8xi1>, vector<8x8xf32>
      %c0_25 = arith.constant 0 : index
      %c0_26 = arith.constant 0 : index
      %c0_27 = arith.constant 0 : index
      %54 = vector.load %arg11[%c0_25, %c0_26, %c0_27] : memref<4x8x1xf32, #tpu.memory_space<vmem>>, vector<1x8x1xf32>
      %55 = vector.shape_cast %54 : vector<1x8x1xf32> to vector<8x1xf32>
      %cst_28 = arith.constant dense<0xFF800000> : vector<8xf32>
      %56 = vector.multi_reduction <maximumf>, %53, %cst_28 [1] : vector<8x8xf32> to vector<8xf32>
      %57 = vector.shape_cast %56 : vector<8xf32> to vector<8x1xf32>
      %58 = arith.maximumf %55, %57 : vector<8x1xf32>
      %59 = arith.subf %55, %58 : vector<8x1xf32>
      %60 = math.exp %59 : vector<8x1xf32>
      %61 = vector.broadcast %58 : vector<8x1xf32> to vector<8x8xf32>
      %62 = arith.subf %53, %61 : vector<8x8xf32>
      %63 = math.exp %62 : vector<8x8xf32>
      %c0_29 = arith.constant 0 : index
      %c0_30 = arith.constant 0 : index
      %c0_31 = arith.constant 0 : index
      %64 = vector.load %arg12[%c0_29, %c0_30, %c0_31] : memref<4x8x1xf32, #tpu.memory_space<vmem>>, vector<1x8x1xf32>
      %65 = vector.shape_cast %64 : vector<1x8x1xf32> to vector<8x1xf32>
      %66 = arith.mulf %60, %65 : vector<8x1xf32>
      %cst_32 = arith.constant dense<0.000000e+00> : vector<8xf32>
      %67 = vector.multi_reduction <add>, %63, %cst_32 [1] : vector<8x8xf32> to vector<8xf32>
      %68 = vector.shape_cast %67 : vector<8xf32> to vector<8x1xf32>
      %69 = arith.addf %66, %68 : vector<8x1xf32>
      %c0_33 = arith.constant 0 : index
      %c0_34 = arith.constant 0 : index
      %c0_35 = arith.constant 0 : index
      %70 = vector.load %arg12[%c0_33, %c0_34, %c0_35] : memref<4x8x1xf32, #tpu.memory_space<vmem>>, vector<1x8x1xf32>
      %71 = vector.shape_cast %70 : vector<1x8x1xf32> to vector<8x1xf32>
      %72 = vector.shape_cast %69 : vector<8x1xf32> to vector<1x8x1xf32>
      tpu.vector_store %arg12[%c0_33, %c0_34, %c0_35], %72 {strides = array<i32>} : memref<4x8x1xf32, #tpu.memory_space<vmem>>, vector<1x8x1xf32>,
      %c0_36 = arith.constant 0 : index
      %c0_37 = arith.constant 0 : index
      %c0_38 = arith.constant 0 : index
      %73 = vector.load %arg13[%c0_36, %c0_37, %c0_38] : memref<4x8x8xf32, #tpu.memory_space<vmem>>, vector<1x8x8xf32>
      %74 = vector.shape_cast %73 : vector<1x8x8xf32> to vector<8x8xf32>
      %75 = vector.broadcast %60 : vector<8x1xf32> to vector<8x8xf32>
      %76 = arith.mulf %75, %74 : vector<8x8xf32>
      %77 = arith.truncf %63 : vector<8x8xf32> to vector<8x8xbf16>
      %cst_39 = arith.constant dense<0.000000e+00> : vector<8x8xf32>
      %78 = tpu.matmul %77, %49, %cst_39 {dimension_numbers = #tpu.dot_dimension_numbers<[1], [0], [0], [1], [0, 0, 1, 1], [], []>} : vector<8x8xbf16>, vector<8x8xbf16>, vector<8x8xf32> -> vector<8x8xf32>
      %79 = arith.addf %76, %78 : vector<8x8xf32>
      %c0_40 = arith.constant 0 : index
      %c0_41 = arith.constant 0 : index
      %c0_42 = arith.constant 0 : index
      %80 = vector.load %arg13[%c0_40, %c0_41, %c0_42] : memref<4x8x8xf32, #tpu.memory_space<vmem>>, vector<1x8x8xf32>
      %81 = vector.shape_cast %80 : vector<1x8x8xf32> to vector<8x8xf32>
      %82 = vector.shape_cast %79 : vector<8x8xf32> to vector<1x8x8xf32>
      tpu.vector_store %arg13[%c0_40, %c0_41, %c0_42], %82 {strides = array<i32>} : memref<4x8x8xf32, #tpu.memory_space<vmem>>, vector<1x8x8xf32>,
      %c0_43 = arith.constant 0 : index
      %c0_44 = arith.constant 0 : index
      %c0_45 = arith.constant 0 : index
      %83 = vector.load %arg11[%c0_43, %c0_44, %c0_45] : memref<4x8x1xf32, #tpu.memory_space<vmem>>, vector<1x8x1xf32>
      %84 = vector.shape_cast %83 : vector<1x8x1xf32> to vector<8x1xf32>
      %85 = vector.shape_cast %58 : vector<8x1xf32> to vector<1x8x1xf32>
      tpu.vector_store %arg11[%c0_43, %c0_44, %c0_45], %85 {strides = array<i32>} : memref<4x8x1xf32, #tpu.memory_space<vmem>>, vector<1x8x1xf32>,
      %86 = vector.extract_strided_slice %27 {offsets = [0, 8], sizes = [8, 8], strides = [1, 1]} : vector<8x32xf32> to vector<8x8xf32>
      %87 = vector.extract_strided_slice %86 {offsets = [0, 0], sizes = [8, 4], strides = [1, 1]} : vector<8x8xf32> to vector<8x4xf32>
      %88 = vector.extract_strided_slice %86 {offsets = [0, 4], sizes = [8, 4], strides = [1, 1]} : vector<8x8xf32> to vector<8x4xf32>
      %89 = tpu.concatenate %88, %87 in 1 : vector<8x4xf32>, vector<8x4xf32> -> vector<8x8xf32>
      %90 = arith.mulf %86, %13 : vector<8x8xf32>
      %91 = arith.mulf %89, %14 : vector<8x8xf32>
      %92 = arith.addf %90, %91 : vector<8x8xf32>
      %93 = arith.truncf %92 : vector<8x8xf32> to vector<8x8xbf16>
      %94 = vector.extract_strided_slice %29 {offsets = [0, 8], sizes = [8, 8], strides = [1, 1]} : vector<8x32xf32> to vector<8x8xf32>
      %95 = vector.extract_strided_slice %94 {offsets = [0, 0], sizes = [8, 4], strides = [1, 1]} : vector<8x8xf32> to vector<8x4xf32>
      %96 = vector.extract_strided_slice %94 {offsets = [0, 4], sizes = [8, 4], strides = [1, 1]} : vector<8x8xf32> to vector<8x4xf32>
      %97 = tpu.concatenate %96, %95 in 1 : vector<8x4xf32>, vector<8x4xf32> -> vector<8x8xf32>
      %98 = arith.mulf %94, %15 : vector<8x8xf32>
      %99 = arith.mulf %97, %16 : vector<8x8xf32>
      %100 = arith.addf %98, %99 : vector<8x8xf32>
      %101 = arith.truncf %100 : vector<8x8xf32> to vector<8x8xbf16>
      %102 = vector.extract_strided_slice %31 {offsets = [0, 8], sizes = [8, 8], strides = [1, 1]} : vector<8x32xf32> to vector<8x8xf32>
      %103 = arith.truncf %102 : vector<8x8xf32> to vector<8x8xbf16>
      %104 = tpu.transpose %101, [1, 0] : vector<8x8xbf16> -> vector<8x8xbf16>
      %cst_46 = arith.constant dense<0.000000e+00> : vector<8x8xf32>
      %105 = tpu.matmul %93, %104, %cst_46 {dimension_numbers = #tpu.dot_dimension_numbers<[1], [0], [0], [1], [0, 0, 1, 1], [], []>} : vector<8x8xbf16>, vector<8x8xbf16>, vector<8x8xf32> -> vector<8x8xf32>
      %cst_47 = arith.constant -1.000000e+30 : f32
      %106 = vector.broadcast %cst_47 : f32 to vector<8x8xf32>
      %107 = arith.select %25, %105, %106 : vector<8x8xi1>, vector<8x8xf32>
      %c1 = arith.constant 1 : index
      %c0_48 = arith.constant 0 : index
      %c0_49 = arith.constant 0 : index
      %108 = vector.load %arg11[%c1, %c0_48, %c0_49] : memref<4x8x1xf32, #tpu.memory_space<vmem>>, vector<1x8x1xf32>
      %109 = vector.shape_cast %108 : vector<1x8x1xf32> to vector<8x1xf32>
      %cst_50 = arith.constant dense<0xFF800000> : vector<8xf32>
      %110 = vector.multi_reduction <maximumf>, %107, %cst_50 [1] : vector<8x8xf32> to vector<8xf32>
      %111 = vector.shape_cast %110 : vector<8xf32> to vector<8x1xf32>
      %112 = arith.maximumf %109, %111 : vector<8x1xf32>
      %113 = arith.subf %109, %112 : vector<8x1xf32>
      %114 = math.exp %113 : vector<8x1xf32>
      %115 = vector.broadcast %112 : vector<8x1xf32> to vector<8x8xf32>
      %116 = arith.subf %107, %115 : vector<8x8xf32>
      %117 = math.exp %116 : vector<8x8xf32>
      %c1_51 = arith.constant 1 : index
      %c0_52 = arith.constant 0 : index
      %c0_53 = arith.constant 0 : index
      %118 = vector.load %arg12[%c1_51, %c0_52, %c0_53] : memref<4x8x1xf32, #tpu.memory_space<vmem>>, vector<1x8x1xf32>
      %119 = vector.shape_cast %118 : vector<1x8x1xf32> to vector<8x1xf32>
      %120 = arith.mulf %114, %119 : vector<8x1xf32>
      %cst_54 = arith.constant dense<0.000000e+00> : vector<8xf32>
      %121 = vector.multi_reduction <add>, %117, %cst_54 [1] : vector<8x8xf32> to vector<8xf32>
      %122 = vector.shape_cast %121 : vector<8xf32> to vector<8x1xf32>
      %123 = arith.addf %120, %122 : vector<8x1xf32>
      %c1_55 = arith.constant 1 : index
      %c0_56 = arith.constant 0 : index
      %c0_57 = arith.constant 0 : index
      %124 = vector.load %arg12[%c1_55, %c0_56, %c0_57] : memref<4x8x1xf32, #tpu.memory_space<vmem>>, vector<1x8x1xf32>
      %125 = vector.shape_cast %124 : vector<1x8x1xf32> to vector<8x1xf32>
      %126 = vector.shape_cast %123 : vector<8x1xf32> to vector<1x8x1xf32>
      tpu.vector_store %arg12[%c1_55, %c0_56, %c0_57], %126 {strides = array<i32>} : memref<4x8x1xf32, #tpu.memory_space<vmem>>, vector<1x8x1xf32>,
      %c1_58 = arith.constant 1 : index
      %c0_59 = arith.constant 0 : index
      %c0_60 = arith.constant 0 : index
      %127 = vector.load %arg13[%c1_58, %c0_59, %c0_60] : memref<4x8x8xf32, #tpu.memory_space<vmem>>, vector<1x8x8xf32>
      %128 = vector.shape_cast %127 : vector<1x8x8xf32> to vector<8x8xf32>
      %129 = vector.broadcast %114 : vector<8x1xf32> to vector<8x8xf32>
      %130 = arith.mulf %129, %128 : vector<8x8xf32>
      %131 = arith.truncf %117 : vector<8x8xf32> to vector<8x8xbf16>
      %cst_61 = arith.constant dense<0.000000e+00> : vector<8x8xf32>
      %132 = tpu.matmul %131, %103, %cst_61 {dimension_numbers = #tpu.dot_dimension_numbers<[1], [0], [0], [1], [0, 0, 1, 1], [], []>} : vector<8x8xbf16>, vector<8x8xbf16>, vector<8x8xf32> -> vector<8x8xf32>
      %133 = arith.addf %130, %132 : vector<8x8xf32>
      %c1_62 = arith.constant 1 : index
      %c0_63 = arith.constant 0 : index
      %c0_64 = arith.constant 0 : index
      %134 = vector.load %arg13[%c1_62, %c0_63, %c0_64] : memref<4x8x8xf32, #tpu.memory_space<vmem>>, vector<1x8x8xf32>
      %135 = vector.shape_cast %134 : vector<1x8x8xf32> to vector<8x8xf32>
      %136 = vector.shape_cast %133 : vector<8x8xf32> to vector<1x8x8xf32>
      tpu.vector_store %arg13[%c1_62, %c0_63, %c0_64], %136 {strides = array<i32>} : memref<4x8x8xf32, #tpu.memory_space<vmem>>, vector<1x8x8xf32>,
      %c1_65 = arith.constant 1 : index
      %c0_66 = arith.constant 0 : index
      %c0_67 = arith.constant 0 : index
      %137 = vector.load %arg11[%c1_65, %c0_66, %c0_67] : memref<4x8x1xf32, #tpu.memory_space<vmem>>, vector<1x8x1xf32>
      %138 = vector.shape_cast %137 : vector<1x8x1xf32> to vector<8x1xf32>
      %139 = vector.shape_cast %112 : vector<8x1xf32> to vector<1x8x1xf32>
      tpu.vector_store %arg11[%c1_65, %c0_66, %c0_67], %139 {strides = array<i32>} : memref<4x8x1xf32, #tpu.memory_space<vmem>>, vector<1x8x1xf32>,
      %140 = vector.extract_strided_slice %27 {offsets = [0, 16], sizes = [8, 8], strides = [1, 1]} : vector<8x32xf32> to vector<8x8xf32>
      %141 = vector.extract_strided_slice %140 {offsets = [0, 0], sizes = [8, 4], strides = [1, 1]} : vector<8x8xf32> to vector<8x4xf32>
      %142 = vector.extract_strided_slice %140 {offsets = [0, 4], sizes = [8, 4], strides = [1, 1]} : vector<8x8xf32> to vector<8x4xf32>
      %143 = tpu.concatenate %142, %141 in 1 : vector<8x4xf32>, vector<8x4xf32> -> vector<8x8xf32>
      %144 = arith.mulf %140, %13 : vector<8x8xf32>
      %145 = arith.mulf %143, %14 : vector<8x8xf32>
      %146 = arith.addf %144, %145 : vector<8x8xf32>
      %147 = arith.truncf %146 : vector<8x8xf32> to vector<8x8xbf16>
      %148 = vector.extract_strided_slice %29 {offsets = [0, 16], sizes = [8, 8], strides = [1, 1]} : vector<8x32xf32> to vector<8x8xf32>
      %149 = vector.extract_strided_slice %148 {offsets = [0, 0], sizes = [8, 4], strides = [1, 1]} : vector<8x8xf32> to vector<8x4xf32>
      %150 = vector.extract_strided_slice %148 {offsets = [0, 4], sizes = [8, 4], strides = [1, 1]} : vector<8x8xf32> to vector<8x4xf32>
      %151 = tpu.concatenate %150, %149 in 1 : vector<8x4xf32>, vector<8x4xf32> -> vector<8x8xf32>
      %152 = arith.mulf %148, %15 : vector<8x8xf32>
      %153 = arith.mulf %151, %16 : vector<8x8xf32>
      %154 = arith.addf %152, %153 : vector<8x8xf32>
      %155 = arith.truncf %154 : vector<8x8xf32> to vector<8x8xbf16>
      %156 = vector.extract_strided_slice %31 {offsets = [0, 16], sizes = [8, 8], strides = [1, 1]} : vector<8x32xf32> to vector<8x8xf32>
      %157 = arith.truncf %156 : vector<8x8xf32> to vector<8x8xbf16>
      %158 = tpu.transpose %155, [1, 0] : vector<8x8xbf16> -> vector<8x8xbf16>
      %cst_68 = arith.constant dense<0.000000e+00> : vector<8x8xf32>
      %159 = tpu.matmul %147, %158, %cst_68 {dimension_numbers = #tpu.dot_dimension_numbers<[1], [0], [0], [1], [0, 0, 1, 1], [], []>} : vector<8x8xbf16>, vector<8x8xbf16>, vector<8x8xf32> -> vector<8x8xf32>
      %cst_69 = arith.constant -1.000000e+30 : f32
      %160 = vector.broadcast %cst_69 : f32 to vector<8x8xf32>
      %161 = arith.select %25, %159, %160 : vector<8x8xi1>, vector<8x8xf32>
      %c2 = arith.constant 2 : index
      %c0_70 = arith.constant 0 : index
      %c0_71 = arith.constant 0 : index
      %162 = vector.load %arg11[%c2, %c0_70, %c0_71] : memref<4x8x1xf32, #tpu.memory_space<vmem>>, vector<1x8x1xf32>
      %163 = vector.shape_cast %162 : vector<1x8x1xf32> to vector<8x1xf32>
      %cst_72 = arith.constant dense<0xFF800000> : vector<8xf32>
      %164 = vector.multi_reduction <maximumf>, %161, %cst_72 [1] : vector<8x8xf32> to vector<8xf32>
      %165 = vector.shape_cast %164 : vector<8xf32> to vector<8x1xf32>
      %166 = arith.maximumf %163, %165 : vector<8x1xf32>
      %167 = arith.subf %163, %166 : vector<8x1xf32>
      %168 = math.exp %167 : vector<8x1xf32>
      %169 = vector.broadcast %166 : vector<8x1xf32> to vector<8x8xf32>
      %170 = arith.subf %161, %169 : vector<8x8xf32>
      %171 = math.exp %170 : vector<8x8xf32>
      %c2_73 = arith.constant 2 : index
      %c0_74 = arith.constant 0 : index
      %c0_75 = arith.constant 0 : index
      %172 = vector.load %arg12[%c2_73, %c0_74, %c0_75] : memref<4x8x1xf32, #tpu.memory_space<vmem>>, vector<1x8x1xf32>
      %173 = vector.shape_cast %172 : vector<1x8x1xf32> to vector<8x1xf32>
      %174 = arith.mulf %168, %173 : vector<8x1xf32>
      %cst_76 = arith.constant dense<0.000000e+00> : vector<8xf32>
      %175 = vector.multi_reduction <add>, %171, %cst_76 [1] : vector<8x8xf32> to vector<8xf32>
      %176 = vector.shape_cast %175 : vector<8xf32> to vector<8x1xf32>
      %177 = arith.addf %174, %176 : vector<8x1xf32>
      %c2_77 = arith.constant 2 : index
      %c0_78 = arith.constant 0 : index
      %c0_79 = arith.constant 0 : index
      %178 = vector.load %arg12[%c2_77, %c0_78, %c0_79] : memref<4x8x1xf32, #tpu.memory_space<vmem>>, vector<1x8x1xf32>
      %179 = vector.shape_cast %178 : vector<1x8x1xf32> to vector<8x1xf32>
      %180 = vector.shape_cast %177 : vector<8x1xf32> to vector<1x8x1xf32>
      tpu.vector_store %arg12[%c2_77, %c0_78, %c0_79], %180 {strides = array<i32>} : memref<4x8x1xf32, #tpu.memory_space<vmem>>, vector<1x8x1xf32>,
      %c2_80 = arith.constant 2 : index
      %c0_81 = arith.constant 0 : index
      %c0_82 = arith.constant 0 : index
      %181 = vector.load %arg13[%c2_80, %c0_81, %c0_82] : memref<4x8x8xf32, #tpu.memory_space<vmem>>, vector<1x8x8xf32>
      %182 = vector.shape_cast %181 : vector<1x8x8xf32> to vector<8x8xf32>
      %183 = vector.broadcast %168 : vector<8x1xf32> to vector<8x8xf32>
      %184 = arith.mulf %183, %182 : vector<8x8xf32>
      %185 = arith.truncf %171 : vector<8x8xf32> to vector<8x8xbf16>
      %cst_83 = arith.constant dense<0.000000e+00> : vector<8x8xf32>
      %186 = tpu.matmul %185, %157, %cst_83 {dimension_numbers = #tpu.dot_dimension_numbers<[1], [0], [0], [1], [0, 0, 1, 1], [], []>} : vector<8x8xbf16>, vector<8x8xbf16>, vector<8x8xf32> -> vector<8x8xf32>
      %187 = arith.addf %184, %186 : vector<8x8xf32>
      %c2_84 = arith.constant 2 : index
      %c0_85 = arith.constant 0 : index
      %c0_86 = arith.constant 0 : index
      %188 = vector.load %arg13[%c2_84, %c0_85, %c0_86] : memref<4x8x8xf32, #tpu.memory_space<vmem>>, vector<1x8x8xf32>
      %189 = vector.shape_cast %188 : vector<1x8x8xf32> to vector<8x8xf32>
      %190 = vector.shape_cast %187 : vector<8x8xf32> to vector<1x8x8xf32>
      tpu.vector_store %arg13[%c2_84, %c0_85, %c0_86], %190 {strides = array<i32>} : memref<4x8x8xf32, #tpu.memory_space<vmem>>, vector<1x8x8xf32>,
      %c2_87 = arith.constant 2 : index
      %c0_88 = arith.constant 0 : index
      %c0_89 = arith.constant 0 : index
      %191 = vector.load %arg11[%c2_87, %c0_88, %c0_89] : memref<4x8x1xf32, #tpu.memory_space<vmem>>, vector<1x8x1xf32>
      %192 = vector.shape_cast %191 : vector<1x8x1xf32> to vector<8x1xf32>
      %193 = vector.shape_cast %166 : vector<8x1xf32> to vector<1x8x1xf32>
      tpu.vector_store %arg11[%c2_87, %c0_88, %c0_89], %193 {strides = array<i32>} : memref<4x8x1xf32, #tpu.memory_space<vmem>>, vector<1x8x1xf32>,
      %194 = vector.extract_strided_slice %27 {offsets = [0, 24], sizes = [8, 8], strides = [1, 1]} : vector<8x32xf32> to vector<8x8xf32>
      %195 = vector.extract_strided_slice %194 {offsets = [0, 0], sizes = [8, 4], strides = [1, 1]} : vector<8x8xf32> to vector<8x4xf32>
      %196 = vector.extract_strided_slice %194 {offsets = [0, 4], sizes = [8, 4], strides = [1, 1]} : vector<8x8xf32> to vector<8x4xf32>
      %197 = tpu.concatenate %196, %195 in 1 : vector<8x4xf32>, vector<8x4xf32> -> vector<8x8xf32>
      %198 = arith.mulf %194, %13 : vector<8x8xf32>
      %199 = arith.mulf %197, %14 : vector<8x8xf32>
      %200 = arith.addf %198, %199 : vector<8x8xf32>
      %201 = arith.truncf %200 : vector<8x8xf32> to vector<8x8xbf16>
      %202 = vector.extract_strided_slice %29 {offsets = [0, 24], sizes = [8, 8], strides = [1, 1]} : vector<8x32xf32> to vector<8x8xf32>
      %203 = vector.extract_strided_slice %202 {offsets = [0, 0], sizes = [8, 4], strides = [1, 1]} : vector<8x8xf32> to vector<8x4xf32>
      %204 = vector.extract_strided_slice %202 {offsets = [0, 4], sizes = [8, 4], strides = [1, 1]} : vector<8x8xf32> to vector<8x4xf32>
      %205 = tpu.concatenate %204, %203 in 1 : vector<8x4xf32>, vector<8x4xf32> -> vector<8x8xf32>
      %206 = arith.mulf %202, %15 : vector<8x8xf32>
      %207 = arith.mulf %205, %16 : vector<8x8xf32>
      %208 = arith.addf %206, %207 : vector<8x8xf32>
      %209 = arith.truncf %208 : vector<8x8xf32> to vector<8x8xbf16>
      %210 = vector.extract_strided_slice %31 {offsets = [0, 24], sizes = [8, 8], strides = [1, 1]} : vector<8x32xf32> to vector<8x8xf32>
      %211 = arith.truncf %210 : vector<8x8xf32> to vector<8x8xbf16>
      %212 = tpu.transpose %209, [1, 0] : vector<8x8xbf16> -> vector<8x8xbf16>
      %cst_90 = arith.constant dense<0.000000e+00> : vector<8x8xf32>
      %213 = tpu.matmul %201, %212, %cst_90 {dimension_numbers = #tpu.dot_dimension_numbers<[1], [0], [0], [1], [0, 0, 1, 1], [], []>} : vector<8x8xbf16>, vector<8x8xbf16>, vector<8x8xf32> -> vector<8x8xf32>
      %cst_91 = arith.constant -1.000000e+30 : f32
      %214 = vector.broadcast %cst_91 : f32 to vector<8x8xf32>
      %215 = arith.select %25, %213, %214 : vector<8x8xi1>, vector<8x8xf32>
      %c3 = arith.constant 3 : index
      %c0_92 = arith.constant 0 : index
      %c0_93 = arith.constant 0 : index
      %216 = vector.load %arg11[%c3, %c0_92, %c0_93] : memref<4x8x1xf32, #tpu.memory_space<vmem>>, vector<1x8x1xf32>
      %217 = vector.shape_cast %216 : vector<1x8x1xf32> to vector<8x1xf32>
      %cst_94 = arith.constant dense<0xFF800000> : vector<8xf32>
      %218 = vector.multi_reduction <maximumf>, %215, %cst_94 [1] : vector<8x8xf32> to vector<8xf32>
      %219 = vector.shape_cast %218 : vector<8xf32> to vector<8x1xf32>
      %220 = arith.maximumf %217, %219 : vector<8x1xf32>
      %221 = arith.subf %217, %220 : vector<8x1xf32>
      %222 = math.exp %221 : vector<8x1xf32>
      %223 = vector.broadcast %220 : vector<8x1xf32> to vector<8x8xf32>
      %224 = arith.subf %215, %223 : vector<8x8xf32>
      %225 = math.exp %224 : vector<8x8xf32>
      %c3_95 = arith.constant 3 : index
      %c0_96 = arith.constant 0 : index
      %c0_97 = arith.constant 0 : index
      %226 = vector.load %arg12[%c3_95, %c0_96, %c0_97] : memref<4x8x1xf32, #tpu.memory_space<vmem>>, vector<1x8x1xf32>
      %227 = vector.shape_cast %226 : vector<1x8x1xf32> to vector<8x1xf32>
      %228 = arith.mulf %222, %227 : vector<8x1xf32>
      %cst_98 = arith.constant dense<0.000000e+00> : vector<8xf32>
      %229 = vector.multi_reduction <add>, %225, %cst_98 [1] : vector<8x8xf32> to vector<8xf32>
      %230 = vector.shape_cast %229 : vector<8xf32> to vector<8x1xf32>
      %231 = arith.addf %228, %230 : vector<8x1xf32>
      %c3_99 = arith.constant 3 : index
      %c0_100 = arith.constant 0 : index
      %c0_101 = arith.constant 0 : index
      %232 = vector.load %arg12[%c3_99, %c0_100, %c0_101] : memref<4x8x1xf32, #tpu.memory_space<vmem>>, vector<1x8x1xf32>
      %233 = vector.shape_cast %232 : vector<1x8x1xf32> to vector<8x1xf32>
      %234 = vector.shape_cast %231 : vector<8x1xf32> to vector<1x8x1xf32>
      tpu.vector_store %arg12[%c3_99, %c0_100, %c0_101], %234 {strides = array<i32>} : memref<4x8x1xf32, #tpu.memory_space<vmem>>, vector<1x8x1xf32>,
      %c3_102 = arith.constant 3 : index
      %c0_103 = arith.constant 0 : index
      %c0_104 = arith.constant 0 : index
      %235 = vector.load %arg13[%c3_102, %c0_103, %c0_104] : memref<4x8x8xf32, #tpu.memory_space<vmem>>, vector<1x8x8xf32>
      %236 = vector.shape_cast %235 : vector<1x8x8xf32> to vector<8x8xf32>
      %237 = vector.broadcast %222 : vector<8x1xf32> to vector<8x8xf32>
      %238 = arith.mulf %237, %236 : vector<8x8xf32>
      %239 = arith.truncf %225 : vector<8x8xf32> to vector<8x8xbf16>
      %cst_105 = arith.constant dense<0.000000e+00> : vector<8x8xf32>
      %240 = tpu.matmul %239, %211, %cst_105 {dimension_numbers = #tpu.dot_dimension_numbers<[1], [0], [0], [1], [0, 0, 1, 1], [], []>} : vector<8x8xbf16>, vector<8x8xbf16>, vector<8x8xf32> -> vector<8x8xf32>
      %241 = arith.addf %238, %240 : vector<8x8xf32>
      %c3_106 = arith.constant 3 : index
      %c0_107 = arith.constant 0 : index
      %c0_108 = arith.constant 0 : index
      %242 = vector.load %arg13[%c3_106, %c0_107, %c0_108] : memref<4x8x8xf32, #tpu.memory_space<vmem>>, vector<1x8x8xf32>
      %243 = vector.shape_cast %242 : vector<1x8x8xf32> to vector<8x8xf32>
      %244 = vector.shape_cast %241 : vector<8x8xf32> to vector<1x8x8xf32>
      tpu.vector_store %arg13[%c3_106, %c0_107, %c0_108], %244 {strides = array<i32>} : memref<4x8x8xf32, #tpu.memory_space<vmem>>, vector<1x8x8xf32>,
      %c3_109 = arith.constant 3 : index
      %c0_110 = arith.constant 0 : index
      %c0_111 = arith.constant 0 : index
      %245 = vector.load %arg11[%c3_109, %c0_110, %c0_111] : memref<4x8x1xf32, #tpu.memory_space<vmem>>, vector<1x8x1xf32>
      %246 = vector.shape_cast %245 : vector<1x8x1xf32> to vector<8x1xf32>
      %247 = vector.shape_cast %220 : vector<8x1xf32> to vector<1x8x1xf32>
      tpu.vector_store %arg11[%c3_109, %c0_110, %c0_111], %247 {strides = array<i32>} : memref<4x8x1xf32, #tpu.memory_space<vmem>>, vector<1x8x1xf32>,
    } else {
    }
    %c0_i32_4 = arith.constant 0 : i32
    %10 = arith.cmpi eq, %arg2, %c0_i32_4 : i32
    %11 = arith.extui %10 : i1 to i32
    %c0_i32_5 = arith.constant 0 : i32
    %12 = arith.cmpi ne, %11, %c0_i32_5 : i32
    scf.if %12 {
      %c0 = arith.constant 0 : index
      %c0_6 = arith.constant 0 : index
      %c0_7 = arith.constant 0 : index
      %13 = vector.load %arg12[%c0, %c0_6, %c0_7] : memref<4x8x1xf32, #tpu.memory_space<vmem>>, vector<1x8x1xf32>
      %14 = vector.shape_cast %13 : vector<1x8x1xf32> to vector<8x1xf32>
      %15 = tpu.reciprocal %14 {approx = true} : vector<8x1xf32> -> vector<8x1xf32>
      %c0_8 = arith.constant 0 : index
      %c0_9 = arith.constant 0 : index
      %c0_10 = arith.constant 0 : index
      %16 = vector.load %arg13[%c0_8, %c0_9, %c0_10] : memref<4x8x8xf32, #tpu.memory_space<vmem>>, vector<1x8x8xf32>
      %17 = vector.shape_cast %16 : vector<1x8x8xf32> to vector<8x8xf32>
      %18 = vector.broadcast %15 : vector<8x1xf32> to vector<8x8xf32>
      %19 = arith.mulf %17, %18 : vector<8x8xf32>
      %c1 = arith.constant 1 : index
      %c0_11 = arith.constant 0 : index
      %c0_12 = arith.constant 0 : index
      %20 = vector.load %arg12[%c1, %c0_11, %c0_12] : memref<4x8x1xf32, #tpu.memory_space<vmem>>, vector<1x8x1xf32>
      %21 = vector.shape_cast %20 : vector<1x8x1xf32> to vector<8x1xf32>
      %22 = tpu.reciprocal %21 {approx = true} : vector<8x1xf32> -> vector<8x1xf32>
      %c1_13 = arith.constant 1 : index
      %c0_14 = arith.constant 0 : index
      %c0_15 = arith.constant 0 : index
      %23 = vector.load %arg13[%c1_13, %c0_14, %c0_15] : memref<4x8x8xf32, #tpu.memory_space<vmem>>, vector<1x8x8xf32>
      %24 = vector.shape_cast %23 : vector<1x8x8xf32> to vector<8x8xf32>
      %25 = vector.broadcast %22 : vector<8x1xf32> to vector<8x8xf32>
      %26 = arith.mulf %24, %25 : vector<8x8xf32>
      %c2 = arith.constant 2 : index
      %c0_16 = arith.constant 0 : index
      %c0_17 = arith.constant 0 : index
      %27 = vector.load %arg12[%c2, %c0_16, %c0_17] : memref<4x8x1xf32, #tpu.memory_space<vmem>>, vector<1x8x1xf32>
      %28 = vector.shape_cast %27 : vector<1x8x1xf32> to vector<8x1xf32>
      %29 = tpu.reciprocal %28 {approx = true} : vector<8x1xf32> -> vector<8x1xf32>
      %c2_18 = arith.constant 2 : index
      %c0_19 = arith.constant 0 : index
      %c0_20 = arith.constant 0 : index
      %30 = vector.load %arg13[%c2_18, %c0_19, %c0_20] : memref<4x8x8xf32, #tpu.memory_space<vmem>>, vector<1x8x8xf32>
      %31 = vector.shape_cast %30 : vector<1x8x8xf32> to vector<8x8xf32>
      %32 = vector.broadcast %29 : vector<8x1xf32> to vector<8x8xf32>
      %33 = arith.mulf %31, %32 : vector<8x8xf32>
      %c3 = arith.constant 3 : index
      %c0_21 = arith.constant 0 : index
      %c0_22 = arith.constant 0 : index
      %34 = vector.load %arg12[%c3, %c0_21, %c0_22] : memref<4x8x1xf32, #tpu.memory_space<vmem>>, vector<1x8x1xf32>
      %35 = vector.shape_cast %34 : vector<1x8x1xf32> to vector<8x1xf32>
      %36 = tpu.reciprocal %35 {approx = true} : vector<8x1xf32> -> vector<8x1xf32>
      %c3_23 = arith.constant 3 : index
      %c0_24 = arith.constant 0 : index
      %c0_25 = arith.constant 0 : index
      %37 = vector.load %arg13[%c3_23, %c0_24, %c0_25] : memref<4x8x8xf32, #tpu.memory_space<vmem>>, vector<1x8x8xf32>
      %38 = vector.shape_cast %37 : vector<1x8x8xf32> to vector<8x8xf32>
      %39 = vector.broadcast %36 : vector<8x1xf32> to vector<8x8xf32>
      %40 = arith.mulf %38, %39 : vector<8x8xf32>
      %41 = tpu.concatenate %19, %26, %33, %40 in 1 : vector<8x8xf32>, vector<8x8xf32>, vector<8x8xf32>, vector<8x8xf32> -> vector<8x32xf32>
      %c0_26 = arith.constant 0 : index
      %c0_27 = arith.constant 0 : index
      %c0_28 = arith.constant 0 : index
      %42 = vector.load %arg10[%c0_26, %c0_27, %c0_28] : memref<1x8x32xf32, #tpu.memory_space<vmem>>, vector<1x8x32xf32>
      %43 = vector.shape_cast %42 : vector<1x8x32xf32> to vector<8x32xf32>
      %44 = vector.shape_cast %41 : vector<8x32xf32> to vector<1x8x32xf32>
      tpu.vector_store %arg10[%c0_26, %c0_27, %c0_28], %44 {strides = array<i32>} : memref<1x8x32xf32, #tpu.memory_space<vmem>>, vector<1x8x32xf32>,
    } else {
    }
    return
  }
  func.func @transform_0(%arg0: i32, %arg1: i32, %arg2: i32) -> (i32, i32, i32) {
    %c0_i32 = arith.constant 0 : i32
    %c0_i32_0 = arith.constant 0 : i32
    return %arg0, %arg1, %c0_i32 : i32, i32, i32
  }
  func.func @transform_1(%arg0: i32, %arg1: i32, %arg2: i32) -> (i32, i32, i32) {
    %c0_i32 = arith.constant 0 : i32
    %c0_i32_0 = arith.constant 0 : i32
    return %arg0, %arg2, %c0_i32 : i32, i32, i32
  }
  func.func @transform_2(%arg0: i32, %arg1: i32, %arg2: i32) -> (i32, i32, i32) {
    %c0_i32 = arith.constant 0 : i32
    %c0_i32_0 = arith.constant 0 : i32
    return %arg0, %arg2, %c0_i32 : i32, i32, i32
  }
  func.func @transform_3(%arg0: i32, %arg1: i32, %arg2: i32) -> (i32, i32) {
    %c0_i32 = arith.constant 0 : i32
    %c0_i32_0 = arith.constant 0 : i32
    return %arg1, %c0_i32 : i32, i32
  }
  func.func @transform_4(%arg0: i32, %arg1: i32, %arg2: i32) -> (i32, i32) {
    %c0_i32 = arith.constant 0 : i32
    %c0_i32_0 = arith.constant 0 : i32
    return %arg1, %c0_i32 : i32, i32
  }
  func.func @transform_5(%arg0: i32, %arg1: i32, %arg2: i32) -> (i32, i32) {
    %c0_i32 = arith.constant 0 : i32
    %c0_i32_0 = arith.constant 0 : i32
    return %arg2, %c0_i32 : i32, i32
  }
  func.func @transform_6(%arg0: i32, %arg1: i32, %arg2: i32) -> (i32, i32) {
    %c0_i32 = arith.constant 0 : i32
    %c0_i32_0 = arith.constant 0 : i32
    return %arg2, %c0_i32 : i32, i32
  }
  func.func @transform_7(%arg0: i32, %arg1: i32, %arg2: i32) -> (i32, i32, i32) {
    %c0_i32 = arith.constant 0 : i32
    %c0_i32_0 = arith.constant 0 : i32
    return %arg0, %arg1, %c0_i32 : i32, i32, i32
  }
}

module attributes {stable_mosaic.version = 11 : i64} {
  func.func @_proj_mlp_kernel(%arg0: i32, %arg1: memref<16x32xf32, #tpu.memory_space<vmem>>, %arg2: memref<16x32xf32, #tpu.memory_space<vmem>>, %arg3: memref<32x32xbf16, #tpu.memory_space<vmem>>, %arg4: memref<1x32xf32, #tpu.memory_space<vmem>>, %arg5: memref<1x32xf32, #tpu.memory_space<vmem>>, %arg6: memref<32x128xbf16, #tpu.memory_space<vmem>>, %arg7: memref<1x128xf32, #tpu.memory_space<vmem>>, %arg8: memref<32x128xbf16, #tpu.memory_space<vmem>>, %arg9: memref<1x128xf32, #tpu.memory_space<vmem>>, %arg10: memref<128x32xbf16, #tpu.memory_space<vmem>>, %arg11: memref<1x32xf32, #tpu.memory_space<vmem>>, %arg12: memref<16x32xf32, #tpu.memory_space<vmem>>) attributes {dimension_semantics = [#tpu.dimension_semantics<parallel>], iteration_bounds = array<i64: 1>, scalar_prefetch = 0 : i64, scratch_operands = 0 : i64, tpu.core_type = #tpu.core_type<tc>, window_params = [{transform_indices = @transform_0, window_bounds = array<i64: 16, 32>}, {transform_indices = @transform_1, window_bounds = array<i64: 16, 32>}, {pipeline_mode = #tpu.pipeline_mode<synchronous>, transform_indices = @transform_2, window_bounds = array<i64: 32, 32>}, {pipeline_mode = #tpu.pipeline_mode<synchronous>, transform_indices = @transform_3, window_bounds = array<i64: 1, 32>}, {pipeline_mode = #tpu.pipeline_mode<synchronous>, transform_indices = @transform_4, window_bounds = array<i64: 1, 32>}, {pipeline_mode = #tpu.pipeline_mode<synchronous>, transform_indices = @transform_5, window_bounds = array<i64: 32, 128>}, {pipeline_mode = #tpu.pipeline_mode<synchronous>, transform_indices = @transform_6, window_bounds = array<i64: 1, 128>}, {pipeline_mode = #tpu.pipeline_mode<synchronous>, transform_indices = @transform_7, window_bounds = array<i64: 32, 128>}, {pipeline_mode = #tpu.pipeline_mode<synchronous>, transform_indices = @transform_8, window_bounds = array<i64: 1, 128>}, {pipeline_mode = #tpu.pipeline_mode<synchronous>, transform_indices = @transform_9, window_bounds = array<i64: 128, 32>}, {pipeline_mode = #tpu.pipeline_mode<synchronous>, transform_indices = @transform_10, window_bounds = array<i64: 1, 32>}, {transform_indices = @transform_11, window_bounds = array<i64: 16, 32>}]} {
    %c0 = arith.constant 0 : index
    %c0_0 = arith.constant 0 : index
    %0 = vector.load %arg2[%c0, %c0_0] : memref<16x32xf32, #tpu.memory_space<vmem>>, vector<16x32xf32>
    %c0_1 = arith.constant 0 : index
    %c0_2 = arith.constant 0 : index
    %1 = vector.load %arg1[%c0_1, %c0_2] : memref<16x32xf32, #tpu.memory_space<vmem>>, vector<16x32xf32>
    %2 = arith.truncf %1 : vector<16x32xf32> to vector<16x32xbf16>
    %c0_3 = arith.constant 0 : index
    %c0_4 = arith.constant 0 : index
    %3 = vector.load %arg3[%c0_3, %c0_4] : memref<32x32xbf16, #tpu.memory_space<vmem>>, vector<32x32xbf16>
    %cst = arith.constant dense<0.000000e+00> : vector<16x32xf32>
    %4 = tpu.matmul %2, %3, %cst {dimension_numbers = #tpu.dot_dimension_numbers<[1], [0], [0], [1], [0, 0, 1, 1], [], []>} : vector<16x32xbf16>, vector<32x32xbf16>, vector<16x32xf32> -> vector<16x32xf32>
    %5 = arith.addf %0, %4 : vector<16x32xf32>
    %cst_5 = arith.constant dense<0.000000e+00> : vector<16xf32>
    %6 = vector.multi_reduction <add>, %5, %cst_5 [1] : vector<16x32xf32> to vector<16xf32>
    %7 = vector.shape_cast %6 : vector<16xf32> to vector<16x1xf32>
    %cst_6 = arith.constant 3.200000e+01 : f32
    %8 = vector.broadcast %cst_6 : f32 to vector<16x1xf32>
    %9 = arith.divf %7, %8 : vector<16x1xf32>
    %10 = vector.broadcast %9 : vector<16x1xf32> to vector<16x32xf32>
    %11 = arith.subf %5, %10 : vector<16x32xf32>
    %12 = arith.mulf %11, %11 : vector<16x32xf32>
    %cst_7 = arith.constant dense<0.000000e+00> : vector<16xf32>
    %13 = vector.multi_reduction <add>, %12, %cst_7 [1] : vector<16x32xf32> to vector<16xf32>
    %14 = vector.shape_cast %13 : vector<16xf32> to vector<16x1xf32>
    %cst_8 = arith.constant 3.200000e+01 : f32
    %15 = vector.broadcast %cst_8 : f32 to vector<16x1xf32>
    %16 = arith.divf %14, %15 : vector<16x1xf32>
    %17 = vector.broadcast %9 : vector<16x1xf32> to vector<16x32xf32>
    %18 = arith.subf %5, %17 : vector<16x32xf32>
    %cst_9 = arith.constant 9.99999974E-6 : f32
    %19 = vector.broadcast %cst_9 : f32 to vector<16x1xf32>
    %20 = arith.addf %16, %19 : vector<16x1xf32>
    %21 = math.rsqrt %20 : vector<16x1xf32>
    %22 = vector.broadcast %21 : vector<16x1xf32> to vector<16x32xf32>
    %23 = arith.mulf %18, %22 : vector<16x32xf32>
    %c0_10 = arith.constant 0 : index
    %c0_11 = arith.constant 0 : index
    %24 = vector.load %arg4[%c0_10, %c0_11] : memref<1x32xf32, #tpu.memory_space<vmem>>, vector<1x32xf32>
    %25 = vector.broadcast %24 : vector<1x32xf32> to vector<16x32xf32>
    %26 = arith.mulf %23, %25 : vector<16x32xf32>
    %c0_12 = arith.constant 0 : index
    %c0_13 = arith.constant 0 : index
    %27 = vector.load %arg5[%c0_12, %c0_13] : memref<1x32xf32, #tpu.memory_space<vmem>>, vector<1x32xf32>
    %28 = vector.broadcast %27 : vector<1x32xf32> to vector<16x32xf32>
    %29 = arith.addf %26, %28 : vector<16x32xf32>
    %30 = arith.truncf %29 : vector<16x32xf32> to vector<16x32xbf16>
    %c0_14 = arith.constant 0 : index
    %c0_15 = arith.constant 0 : index
    %31 = vector.load %arg6[%c0_14, %c0_15] : memref<32x128xbf16, #tpu.memory_space<vmem>>, vector<32x128xbf16>
    %cst_16 = arith.constant dense<0.000000e+00> : vector<16x128xf32>
    %32 = tpu.matmul %30, %31, %cst_16 {dimension_numbers = #tpu.dot_dimension_numbers<[1], [0], [0], [1], [0, 0, 1, 1], [], []>} : vector<16x32xbf16>, vector<32x128xbf16>, vector<16x128xf32> -> vector<16x128xf32>
    %c0_17 = arith.constant 0 : index
    %c0_18 = arith.constant 0 : index
    %33 = vector.load %arg7[%c0_17, %c0_18] : memref<1x128xf32, #tpu.memory_space<vmem>>, vector<1x128xf32>
    %34 = vector.broadcast %33 : vector<1x128xf32> to vector<16x128xf32>
    %35 = arith.addf %32, %34 : vector<16x128xf32>
    %c0_19 = arith.constant 0 : index
    %c0_20 = arith.constant 0 : index
    %36 = vector.load %arg8[%c0_19, %c0_20] : memref<32x128xbf16, #tpu.memory_space<vmem>>, vector<32x128xbf16>
    %cst_21 = arith.constant dense<0.000000e+00> : vector<16x128xf32>
    %37 = tpu.matmul %30, %36, %cst_21 {dimension_numbers = #tpu.dot_dimension_numbers<[1], [0], [0], [1], [0, 0, 1, 1], [], []>} : vector<16x32xbf16>, vector<32x128xbf16>, vector<16x128xf32> -> vector<16x128xf32>
    %c0_22 = arith.constant 0 : index
    %c0_23 = arith.constant 0 : index
    %38 = vector.load %arg9[%c0_22, %c0_23] : memref<1x128xf32, #tpu.memory_space<vmem>>, vector<1x128xf32>
    %39 = vector.broadcast %38 : vector<1x128xf32> to vector<16x128xf32>
    %40 = arith.addf %37, %39 : vector<16x128xf32>
    %cst_24 = arith.constant 5.000000e-01 : f32
    %41 = vector.broadcast %cst_24 : f32 to vector<16x128xf32>
    %42 = arith.mulf %41, %35 : vector<16x128xf32>
    %cst_25 = arith.constant 4.471500e-02 : f32
    %43 = vector.broadcast %cst_25 : f32 to vector<16x128xf32>
    %44 = arith.mulf %43, %35 : vector<16x128xf32>
    %45 = arith.mulf %44, %35 : vector<16x128xf32>
    %46 = arith.mulf %45, %35 : vector<16x128xf32>
    %47 = arith.addf %35, %46 : vector<16x128xf32>
    %cst_26 = arith.constant 0.797884583 : f32
    %48 = vector.broadcast %cst_26 : f32 to vector<16x128xf32>
    %49 = arith.mulf %48, %47 : vector<16x128xf32>
    %50 = math.tanh %49 : vector<16x128xf32>
    %cst_27 = arith.constant 1.000000e+00 : f32
    %51 = vector.broadcast %cst_27 : f32 to vector<16x128xf32>
    %52 = arith.addf %51, %50 : vector<16x128xf32>
    %53 = arith.mulf %42, %52 : vector<16x128xf32>
    %54 = arith.mulf %53, %40 : vector<16x128xf32>
    %55 = arith.truncf %54 : vector<16x128xf32> to vector<16x128xbf16>
    %c0_28 = arith.constant 0 : index
    %c0_29 = arith.constant 0 : index
    %56 = vector.load %arg10[%c0_28, %c0_29] : memref<128x32xbf16, #tpu.memory_space<vmem>>, vector<128x32xbf16>
    %cst_30 = arith.constant dense<0.000000e+00> : vector<16x32xf32>
    %57 = tpu.matmul %55, %56, %cst_30 {dimension_numbers = #tpu.dot_dimension_numbers<[1], [0], [0], [1], [0, 0, 1, 1], [], []>} : vector<16x128xbf16>, vector<128x32xbf16>, vector<16x32xf32> -> vector<16x32xf32>
    %c0_31 = arith.constant 0 : index
    %c0_32 = arith.constant 0 : index
    %58 = vector.load %arg11[%c0_31, %c0_32] : memref<1x32xf32, #tpu.memory_space<vmem>>, vector<1x32xf32>
    %59 = vector.broadcast %58 : vector<1x32xf32> to vector<16x32xf32>
    %60 = arith.addf %57, %59 : vector<16x32xf32>
    %61 = arith.addf %5, %60 : vector<16x32xf32>
    %c0_33 = arith.constant 0 : index
    %c0_34 = arith.constant 0 : index
    %62 = vector.load %arg12[%c0_33, %c0_34] : memref<16x32xf32, #tpu.memory_space<vmem>>, vector<16x32xf32>
    tpu.vector_store %arg12[%c0_33, %c0_34], %61 {strides = array<i32>} : memref<16x32xf32, #tpu.memory_space<vmem>>, vector<16x32xf32>,
    return
  }
  func.func @transform_0(%arg0: i32) -> (i32, i32) {
    %c0_i32 = arith.constant 0 : i32
    %c0_i32_0 = arith.constant 0 : i32
    return %arg0, %c0_i32 : i32, i32
  }
  func.func @transform_1(%arg0: i32) -> (i32, i32) {
    %c0_i32 = arith.constant 0 : i32
    %c0_i32_0 = arith.constant 0 : i32
    return %arg0, %c0_i32 : i32, i32
  }
  func.func @transform_2(%arg0: i32) -> (i32, i32) {
    %c0_i32 = arith.constant 0 : i32
    %c0_i32_0 = arith.constant 0 : i32
    %c0_i32_1 = arith.constant 0 : i32
    return %c0_i32, %c0_i32_0 : i32, i32
  }
  func.func @transform_3(%arg0: i32) -> (i32, i32) {
    %c0_i32 = arith.constant 0 : i32
    %c0_i32_0 = arith.constant 0 : i32
    %c0_i32_1 = arith.constant 0 : i32
    return %c0_i32, %c0_i32_0 : i32, i32
  }
  func.func @transform_4(%arg0: i32) -> (i32, i32) {
    %c0_i32 = arith.constant 0 : i32
    %c0_i32_0 = arith.constant 0 : i32
    %c0_i32_1 = arith.constant 0 : i32
    return %c0_i32, %c0_i32_0 : i32, i32
  }
  func.func @transform_5(%arg0: i32) -> (i32, i32) {
    %c0_i32 = arith.constant 0 : i32
    %c0_i32_0 = arith.constant 0 : i32
    %c0_i32_1 = arith.constant 0 : i32
    return %c0_i32, %c0_i32_0 : i32, i32
  }
  func.func @transform_6(%arg0: i32) -> (i32, i32) {
    %c0_i32 = arith.constant 0 : i32
    %c0_i32_0 = arith.constant 0 : i32
    %c0_i32_1 = arith.constant 0 : i32
    return %c0_i32, %c0_i32_0 : i32, i32
  }
  func.func @transform_7(%arg0: i32) -> (i32, i32) {
    %c0_i32 = arith.constant 0 : i32
    %c0_i32_0 = arith.constant 0 : i32
    %c0_i32_1 = arith.constant 0 : i32
    return %c0_i32, %c0_i32_0 : i32, i32
  }
  func.func @transform_8(%arg0: i32) -> (i32, i32) {
    %c0_i32 = arith.constant 0 : i32
    %c0_i32_0 = arith.constant 0 : i32
    %c0_i32_1 = arith.constant 0 : i32
    return %c0_i32, %c0_i32_0 : i32, i32
  }
  func.func @transform_9(%arg0: i32) -> (i32, i32) {
    %c0_i32 = arith.constant 0 : i32
    %c0_i32_0 = arith.constant 0 : i32
    %c0_i32_1 = arith.constant 0 : i32
    return %c0_i32, %c0_i32_0 : i32, i32
  }
  func.func @transform_10(%arg0: i32) -> (i32, i32) {
    %c0_i32 = arith.constant 0 : i32
    %c0_i32_0 = arith.constant 0 : i32
    %c0_i32_1 = arith.constant 0 : i32
    return %c0_i32, %c0_i32_0 : i32, i32
  }
  func.func @transform_11(%arg0: i32) -> (i32, i32) {
    %c0_i32 = arith.constant 0 : i32
    %c0_i32_0 = arith.constant 0 : i32
    return %arg0, %c0_i32 : i32, i32
  }
}

module attributes {stable_mosaic.version = 11 : i64} {
  func.func @_ln_head_kernel(%arg0: i32, %arg1: i32, %arg2: memref<16x32xf32, #tpu.memory_space<vmem>>, %arg3: memref<1x32xf32, #tpu.memory_space<vmem>>, %arg4: memref<1x32xf32, #tpu.memory_space<vmem>>, %arg5: memref<32x64xbf16, #tpu.memory_space<vmem>>, %arg6: memref<16x64xf32, #tpu.memory_space<vmem>>) attributes {dimension_semantics = [#tpu.dimension_semantics<parallel>, #tpu.dimension_semantics<parallel>], iteration_bounds = array<i64: 1, 1>, scalar_prefetch = 0 : i64, scratch_operands = 0 : i64, tpu.core_type = #tpu.core_type<tc>, window_params = [{transform_indices = @transform_0, window_bounds = array<i64: 16, 32>}, {pipeline_mode = #tpu.pipeline_mode<synchronous>, transform_indices = @transform_1, window_bounds = array<i64: 1, 32>}, {pipeline_mode = #tpu.pipeline_mode<synchronous>, transform_indices = @transform_2, window_bounds = array<i64: 1, 32>}, {transform_indices = @transform_3, window_bounds = array<i64: 32, 64>}, {transform_indices = @transform_4, window_bounds = array<i64: 16, 64>}]} {
    %c0 = arith.constant 0 : index
    %c0_0 = arith.constant 0 : index
    %0 = vector.load %arg2[%c0, %c0_0] : memref<16x32xf32, #tpu.memory_space<vmem>>, vector<16x32xf32>
    %cst = arith.constant dense<0.000000e+00> : vector<16xf32>
    %1 = vector.multi_reduction <add>, %0, %cst [1] : vector<16x32xf32> to vector<16xf32>
    %2 = vector.shape_cast %1 : vector<16xf32> to vector<16x1xf32>
    %cst_1 = arith.constant 3.200000e+01 : f32
    %3 = vector.broadcast %cst_1 : f32 to vector<16x1xf32>
    %4 = arith.divf %2, %3 : vector<16x1xf32>
    %5 = vector.broadcast %4 : vector<16x1xf32> to vector<16x32xf32>
    %6 = arith.subf %0, %5 : vector<16x32xf32>
    %7 = arith.mulf %6, %6 : vector<16x32xf32>
    %cst_2 = arith.constant dense<0.000000e+00> : vector<16xf32>
    %8 = vector.multi_reduction <add>, %7, %cst_2 [1] : vector<16x32xf32> to vector<16xf32>
    %9 = vector.shape_cast %8 : vector<16xf32> to vector<16x1xf32>
    %cst_3 = arith.constant 3.200000e+01 : f32
    %10 = vector.broadcast %cst_3 : f32 to vector<16x1xf32>
    %11 = arith.divf %9, %10 : vector<16x1xf32>
    %12 = vector.broadcast %4 : vector<16x1xf32> to vector<16x32xf32>
    %13 = arith.subf %0, %12 : vector<16x32xf32>
    %cst_4 = arith.constant 9.99999974E-6 : f32
    %14 = vector.broadcast %cst_4 : f32 to vector<16x1xf32>
    %15 = arith.addf %11, %14 : vector<16x1xf32>
    %16 = math.rsqrt %15 : vector<16x1xf32>
    %17 = vector.broadcast %16 : vector<16x1xf32> to vector<16x32xf32>
    %18 = arith.mulf %13, %17 : vector<16x32xf32>
    %c0_5 = arith.constant 0 : index
    %c0_6 = arith.constant 0 : index
    %19 = vector.load %arg3[%c0_5, %c0_6] : memref<1x32xf32, #tpu.memory_space<vmem>>, vector<1x32xf32>
    %20 = vector.broadcast %19 : vector<1x32xf32> to vector<16x32xf32>
    %21 = arith.mulf %18, %20 : vector<16x32xf32>
    %c0_7 = arith.constant 0 : index
    %c0_8 = arith.constant 0 : index
    %22 = vector.load %arg4[%c0_7, %c0_8] : memref<1x32xf32, #tpu.memory_space<vmem>>, vector<1x32xf32>
    %23 = vector.broadcast %22 : vector<1x32xf32> to vector<16x32xf32>
    %24 = arith.addf %21, %23 : vector<16x32xf32>
    %25 = arith.truncf %24 : vector<16x32xf32> to vector<16x32xbf16>
    %c0_9 = arith.constant 0 : index
    %c0_10 = arith.constant 0 : index
    %26 = vector.load %arg5[%c0_9, %c0_10] : memref<32x64xbf16, #tpu.memory_space<vmem>>, vector<32x64xbf16>
    %cst_11 = arith.constant dense<0.000000e+00> : vector<16x64xf32>
    %27 = tpu.matmul %25, %26, %cst_11 {dimension_numbers = #tpu.dot_dimension_numbers<[1], [0], [0], [1], [0, 0, 1, 1], [], []>} : vector<16x32xbf16>, vector<32x64xbf16>, vector<16x64xf32> -> vector<16x64xf32>
    %c0_12 = arith.constant 0 : index
    %c0_13 = arith.constant 0 : index
    %28 = vector.load %arg6[%c0_12, %c0_13] : memref<16x64xf32, #tpu.memory_space<vmem>>, vector<16x64xf32>
    tpu.vector_store %arg6[%c0_12, %c0_13], %27 {strides = array<i32>} : memref<16x64xf32, #tpu.memory_space<vmem>>, vector<16x64xf32>,
    return
  }
  func.func @transform_0(%arg0: i32, %arg1: i32) -> (i32, i32) {
    %c0_i32 = arith.constant 0 : i32
    %c0_i32_0 = arith.constant 0 : i32
    return %arg0, %c0_i32 : i32, i32
  }
  func.func @transform_1(%arg0: i32, %arg1: i32) -> (i32, i32) {
    %c0_i32 = arith.constant 0 : i32
    %c0_i32_0 = arith.constant 0 : i32
    %c0_i32_1 = arith.constant 0 : i32
    return %c0_i32, %c0_i32_0 : i32, i32
  }
  func.func @transform_2(%arg0: i32, %arg1: i32) -> (i32, i32) {
    %c0_i32 = arith.constant 0 : i32
    %c0_i32_0 = arith.constant 0 : i32
    %c0_i32_1 = arith.constant 0 : i32
    return %c0_i32, %c0_i32_0 : i32, i32
  }
  func.func @transform_3(%arg0: i32, %arg1: i32) -> (i32, i32) {
    %c0_i32 = arith.constant 0 : i32
    %c0_i32_0 = arith.constant 0 : i32
    return %c0_i32, %arg1 : i32, i32
  }
  func.func @transform_4(%arg0: i32, %arg1: i32) -> (i32, i32) {
    %c0_i32 = arith.constant 0 : i32
    return %arg0, %arg1 : i32, i32
  }
}

</mosaic_0001>

<bundles_post_ra>
// kernel: _lambda_.7
= control target key start
LH: loop header
LB: loop body
LE: loop exit
PB: predicated region body
PF: predicated region fallthrough
CT: control target
= control target key end

     0   :  { %vm26_vm0 = vcmask 261120   ;;  %v199_v14 = vmov 0.0   ;;  %vm200_vm1 = vmmov 0   ;;  %s201_s14 = smov 64   ;;  %s293_s0 = inlined_call_operand.vmem [shape: f32[16,32], index: 0, kind: input, shape index: {}]   ;;  %s294_s3 = inlined_call_operand.vmem [shape: bf16[32,96], index: 3, kind: input, shape index: {}]   ;;  %s295_s1 = inlined_call_operand.vmem [shape: f32[1,32], index: 1, kind: input, shape index: {}]   ;;  %s296_s2 = inlined_call_operand.vmem [shape: f32[1,32], index: 2, kind: input, shape index: {}]   ;;  %s297_s4 = inlined_call_operand.vmem [shape: f32[1,96], index: 4, kind: input, shape index: {}]   ;;  %s298_s5 = inlined_call_operand.vmem [shape: f32[16,32], index: 5, kind: output, shape index: {0}]   ;;  %s299_s7 = inlined_call_operand.vmem [shape: f32[16,32], index: 7, kind: output, shape index: {2}]   ;;  %s300_s6 = inlined_call_operand.vmem [shape: f32[16,32], index: 6, kind: output, shape index: {1}]  }
   0x1   :  { %v24_v0 = vld [vmem:[%s293_s0] sm:$0xff]  ;;  %v25_v1 = vld [vmem:[%s293_s0 + $0x8] sm:$0xff]  ;;  %181 = vmatprep.subr.bf16.mxu0 %v199_v14  ;;  %185 = vmatprep.mubr.msk.bf16.mxu0 %vm200_vm1, %v199_v14 }
   0x2   :  { %v27_v2 = vsel %vm26_vm0, %v24_v0, 0.0  ;;  %v30_v3 = vsel %vm26_vm0, %v25_v1, 0.0  ;;  %v193_v15 = vld [vmem:[%s294_s3 + $0x8] sm:$0xff]   ;;  %v194_v16 = vld [vmem:[%s294_s3] sm:$0xff]  }
   0x3   :  { %28 = vadd.xlane.f32.xlu0 %v27_v2  ;;  %182 = vmatpush3.bf16.msra.mxu0 %v193_v15  ;;  %v172_v25 = vld [vmem:[%s295_s1] ss:$0 sm:$0xff] }
   0x4   :  { %183 = vmatprep.subr.bf16.mxu0 %v199_v14  ;;  %v173_v29 = vld [vmem:[%s296_s2] ss:$0 sm:$0xff]  ;;  %s202_s2 = smov 96  }
   0x5   :  { %v174_v34 = vld [vmem:[%s297_s4] ss:$0 sm:$0xff] }
   0x7   :  { %31 = vadd.xlane.f32.xlu0 %v30_v3  ;;  %184 = vmatpush3.bf16.msra.mxu0 %v194_v16 }
  0x8c   :  { %v29_v4 = vpop.xlane.xlu0 %28 }
  0x8d   :  { %v34_v5 = vmul.f32 0.03125, %v29_v4 }
  0x8f   :  { %v36_v6 = vsub.f32 %v24_v0, %v34_v5 }
  0x90   :  { %v32_v7 = vpop.xlane.xlu0 %31 }
  0x91   :  { %v35_v8 = vmul.f32 0.03125, %v32_v7  ;;  %v38_v9 = vmul.f32 %v36_v6, %v36_v6 }
  0x93   :  { %v37_v10 = vsub.f32 %v25_v1, %v35_v8  ;;  %v40_v11 = vsel %vm26_vm0, %v38_v9, 0.0 }
  0x94   :  { %41 = vadd.xlane.f32.xlu1 %v40_v11 }
  0x95   :  { %v39_v12 = vmul.f32 %v37_v10, %v37_v10 }
  0x97   :  { %v43_v13 = vsel %vm26_vm0, %v39_v12, 0.0 }
  0x98   :  { %44 = vadd.xlane.f32.xlu1 %v43_v13 }
 0x11d   :  { %v42_v17 = vpop.xlane.xlu1 %41 }
 0x11e   :  { %v46_v18 = vmul.f32 0.03125, %v42_v17 }
 0x120   :  { %v48_v19 = vadd.f32 1e-05, %v46_v18 }
 0x121   :  { %v45_v20 = vpop.xlane.xlu1 %44 }
 0x122   :  { %195 = vrsqrt.f32 %v48_v19  ;;  %v47_v21 = vmul.f32 0.03125, %v45_v20 }
 0x124   :  { %v49_v22 = vadd.f32 1e-05, %v47_v21 }
 0x126   :  { %197 = vrsqrt.f32 %v49_v22 }
 0x12f   :  { %v196_v23 = vpop.eup %195 }
 0x130   :  { %v52_v24 = vmul.f32 %v196_v23, %v36_v6 }
 0x132   :  { %v61_v28 = vmul.f32 %v172_v25, %v52_v24 }
 0x133   :  { %v198_v26 = vpop.eup %197 }
 0x134   :  { %v53_v27 = vmul.f32 %v198_v26, %v37_v10  ;;  %v70_v31 = vadd.f32 %v173_v29, %v61_v28 }
 0x136   :  { %v62_v30 = vmul.f32 %v172_v25, %v53_v27 }
 0x138   :  { %v71_v32 = vadd.f32 %v173_v29, %v62_v30 }
 0x13a   :  { %v72_v33 = vpack.c.bf16 %v71_v32, %v70_v31 }
 0x13c   :  { %186 = vmatmul.mubr.msk.bf16.vlgmr.msra.gmra.mxu0 %vm26_vm0, %v72_v33 }
 0x1fc   :  { %v133_v35 = vpop.f32.mrf.mxu0 }
 0x1fd   :  { %v134_v36 = vadd.f32 %v174_v34, %v133_v35 }
 0x1fe   :  { %v187_v37 = vpop.f32.mrf.mxu0 }
 0x1ff   :  { %140 = vst.msk [vmem:[%s298_s5] sm:$0xff] %vm26_vm0, %v134_v36  ;;  %152 = vrot.lane.b32.xlu1 %v134_v36, %s201_s14  ;;  %144 = vrot.lane.b32.xlu0 %v134_v36, %s202_s2 }
 0x200   :  { %v136_v38 = vpop.f32.mrf.mxu0 }
 0x201   :  { %v137_v39 = vadd.f32 %v174_v34, %v136_v38 }
 0x202   :  { %v188_v40 = vpop.f32.mrf.mxu0 }
 0x203   :  { %141 = vst.msk [vmem:[%s298_s5 + $0x8] sm:$0xff] %vm26_vm0, %v137_v39  ;;  %146 = vrot.lane.b32.xlu1 %v137_v39, %s202_s2 }
 0x207   :  { %154 = vrot.lane.b32.xlu1 %v137_v39, %s201_s14 }
 0x271   :  { %v153_v41 = vpop.permute.xlu1 %152  ;;  %v145_v42 = vpop.permute.xlu0 %144 }
 0x272   :  { %158 = vst.msk [vmem:[%s299_s7] sm:$0xff] %vm26_vm0, %v153_v41  ;;  %150 = vst.msk [vmem:[%s300_s6] sm:$0xff] %vm26_vm0, %v145_v42 }
 0x275   :  { %v147_v43 = vpop.permute.xlu1 %146 }
 0x276   :  { %151 = vst.msk [vmem:[%s300_s6 + $0x8] sm:$0xff] %vm26_vm0, %v147_v43 }
 0x279   :  { %v155_v44 = vpop.permute.xlu1 %154 }
 0x27a   :  { %159 = vst.msk [vmem:[%s299_s7 + $0x8] sm:$0xff] %vm26_vm0, %v155_v44 }

// kernel: _lambda_.9
= control target key start
LH: loop header
LB: loop body
LE: loop exit
PB: predicated region body
PF: predicated region fallthrough
CT: control target
= control target key end

     0   :  { %v533_v0 = vmov 0.0   ;;  %vm534_vm0 = vmmov 0   ;;  %vm60_vm1 = vcmask 261120   ;;  %s711_s2 = inlined_call_operand.vmem [shape: bf16[32,32], index: 2, kind: input, shape index: {}]   ;;  %s712_s0 = inlined_call_operand.vmem [shape: f32[16,32], index: 0, kind: input, shape index: {}]   ;;  %s713_s1 = inlined_call_operand.vmem [shape: f32[16,32], index: 1, kind: input, shape index: {}]   ;;  %s714_s5 = inlined_call_operand.vmem [shape: bf16[32,128], index: 5, kind: input, shape index: {}]   ;;  %s715_s7 = inlined_call_operand.vmem [shape: bf16[32,128], index: 7, kind: input, shape index: {}]   ;;  %s716_s3 = inlined_call_operand.vmem [shape: f32[1,32], index: 3, kind: input, shape index: {}]   ;;  %s717_s4 = inlined_call_operand.vmem [shape: f32[1,32], index: 4, kind: input, shape index: {}]   ;;  %s718_s9 = inlined_call_operand.vmem [shape: bf16[128,32], index: 9, kind: input, shape index: {}]   ;;  %s719_s6 = inlined_call_operand.vmem [shape: f32[1,128], index: 6, kind: input, shape index: {}]   ;;  %s720_s8 = inlined_call_operand.vmem [shape: f32[1,128], index: 8, kind: input, shape index: {}]   ;;  %s721_s10 = inlined_call_operand.vmem [shape: f32[1,32], index: 10, kind: input, shape index: {}]   ;;  %s722_s11 = inlined_call_operand.vmem [shape: f32[16,32], index: 11, kind: output, shape index: {}]  }
   0x1   :  { %465 = vmatprep.subr.bf16.mxu0 %v533_v0  ;;  %v511_v1 = vld [vmem:[%s711_s2 + $0x8] sm:$0xff]   ;;  %469 = vmatprep.mubr.msk.bf16.mxu0 %vm534_vm0, %v533_v0  ;;  %v512_v2 = vld [vmem:[%s711_s2] sm:$0xff]   ;;  %v517_v47 = vld [vmem:[%s718_s9 + $0x38] sm:$0xff]  }
   0x2   :  { %489 = vmatprep.subr.bf16.mxu1 %v533_v0  ;;  %505 = vmatprep.mubr.msk.bf16.mxu1 %vm534_vm0, %v533_v0  ;;  %v41_v3 = vld [vmem:[%s712_s0] sm:$0xff]  ;;  %v42_v4 = vld [vmem:[%s712_s0 + $0x8] sm:$0xff]  ;;  %v518_v48 = vld [vmem:[%s718_s9 + $0x30] sm:$0xff]  }
   0x3   :  { %466 = vmatpush3.bf16.msra.mxu0 %v511_v1  ;;  %v43_v5 = vpack.c.bf16 %v42_v4, %v41_v3  ;;  %v39_v6 = vld [vmem:[%s713_s1] sm:$0xff]  ;;  %v40_v10 = vld [vmem:[%s713_s1 + $0x8] sm:$0xff]  ;;  %490 = vmatpush3.bf16.msra.mxu1 %v517_v47  ;;  %v521_v51 = vld [vmem:[%s718_s9 + $0x18] sm:$0xff]  }
   0x4   :  { %467 = vmatprep.subr.bf16.mxu0 %v533_v0  ;;  %v513_v26 = vld [vmem:[%s714_s5 + $0x8] sm:$0xff]   ;;  %v514_v27 = vld [vmem:[%s714_s5] sm:$0xff]   ;;  %491 = vmatprep.subr.bf16.mxu1 %v533_v0  ;;  %v522_v52 = vld [vmem:[%s718_s9 + $0x10] sm:$0xff]  }
   0x5   :  { %v428_v36 = vld [vmem:[%s716_s3] ss:$0 sm:$0xff]  ;;  %v515_v44 = vld [vmem:[%s715_s7 + $0x8] sm:$0xff]  }
   0x6   :  { %v429_v40 = vld [vmem:[%s717_s4] ss:$0 sm:$0xff]  ;;  %v519_v49 = vld [vmem:[%s718_s9 + $0x28] sm:$0xff]  }
   0x7   :  { %468 = vmatpush3.bf16.msra.mxu0 %v512_v2  ;;  %v516_v46 = vld [vmem:[%s715_s7] sm:$0xff]   ;;  %492 = vmatpush3.bf16.msra.mxu1 %v518_v48  ;;  %v523_v53 = vld [vmem:[%s718_s9 + $0x8] sm:$0xff]  }
   0x8   :  { %473 = vmatprep.subr.bf16.mxu0 %v533_v0  ;;  %493 = vmatprep.subr.bf16.mxu1 %v533_v0  ;;  %v520_v50 = vld [vmem:[%s718_s9 + $0x20] sm:$0xff]  }
   0x9   :  { %v524_v54 = vld [vmem:[%s718_s9] sm:$0xff]  }
   0xa   :  { %470 = vmatmul.mubr.msk.bf16.vlgmr.msra.gmra.mxu0 %vm60_vm1, %v43_v5  ;;  %v430_v55 = vld [vmem:[%s719_s6] ss:$0 sm:$0xff] }
   0xb   :  { %477 = vmatprep.mubr.msk.bf16.mxu0 %vm534_vm0, %v533_v0  ;;  %474 = vmatpush3.bf16.msra.mxu0 %v513_v26 }
   0xc   :  { %475 = vmatprep.subr.bf16.mxu0 %v533_v0  ;;  %494 = vmatpush3.bf16.msra.mxu1 %v519_v49 }
   0xd   :  { %495 = vmatprep.subr.bf16.mxu1 %v533_v0 }
   0xf   :  { %476 = vmatpush3.bf16.msra.mxu0 %v514_v27 }
  0x10   :  { %481 = vmatprep.subr.bf16.mxu0 %v533_v0  ;;  %496 = vmatpush3.bf16.msra.mxu1 %v520_v50 }
  0x11   :  { %497 = vmatprep.subr.bf16.mxu1 %v533_v0 }
  0x14   :  { %498 = vmatpush3.bf16.msra.mxu1 %v521_v51 }
  0x15   :  { %499 = vmatprep.subr.bf16.mxu1 %v533_v0 }
  0x18   :  { %500 = vmatpush3.bf16.msra.mxu1 %v522_v52 }
  0x19   :  { %501 = vmatprep.subr.bf16.mxu1 %v533_v0 }
  0x1c   :  { %502 = vmatpush3.bf16.msra.mxu1 %v523_v53 }
  0x1d   :  { %503 = vmatprep.subr.bf16.mxu1 %v533_v0 }
  0x20   :  { %504 = vmatpush3.bf16.msra.mxu1 %v524_v54 }
  0xca   :  { %v98_v7 = vpop.f32.mrf.mxu0 }
  0xcb   :  { %v621_v8 = vadd.f32 %v98_v7, %v39_v6 }
  0xcc   :  { %v471_v9 = vpop.f32.mrf.mxu0 }
  0xcd   :  { %v107_v11 = vsel %vm60_vm1, %v621_v8, 0.0 }
  0xce   :  { %108 = vadd.xlane.f32.xlu0 %v107_v11  ;;  %v101_v12 = vpop.f32.mrf.mxu0 }
  0xcf   :  { %v628_v13 = vadd.f32 %v101_v12, %v40_v10 }
  0xd0   :  { %v472_v14 = vpop.f32.mrf.mxu0 }
  0xd1   :  { %v110_v15 = vsel %vm60_vm1, %v628_v13, 0.0 }
  0xd2   :  { %111 = vadd.xlane.f32.xlu0 %v110_v15 }
 0x157   :  { %v109_v16 = vpop.xlane.xlu0 %108 }
 0x158   :  { %v114_v17 = vmul.f32 0.03125, %v109_v16 }
 0x15a   :  { %v116_v18 = vsub.f32 %v621_v8, %v114_v17 }
 0x15b   :  { %v112_v19 = vpop.xlane.xlu0 %111 }
 0x15c   :  { %v115_v20 = vmul.f32 0.03125, %v112_v19  ;;  %v118_v21 = vmul.f32 %v116_v18, %v116_v18 }
 0x15e   :  { %v117_v22 = vsub.f32 %v628_v13, %v115_v20  ;;  %v120_v23 = vsel %vm60_vm1, %v118_v21, 0.0 }
 0x15f   :  { %121 = vadd.xlane.f32.xlu1 %v120_v23 }
 0x160   :  { %v119_v24 = vmul.f32 %v117_v22, %v117_v22 }
 0x162   :  { %v123_v25 = vsel %vm60_vm1, %v119_v24, 0.0 }
 0x163   :  { %124 = vadd.xlane.f32.xlu1 %v123_v25 }
 0x1e8   :  { %v122_v28 = vpop.xlane.xlu1 %121 }
 0x1e9   :  { %v126_v29 = vmul.f32 0.03125, %v122_v28  ;;  %v438_v28 = vld [vmem:[%s721_s10] ss:$0 sm:$0xff] }
 0x1eb   :  { %v128_v30 = vadd.f32 1e-05, %v126_v29 }
 0x1ec   :  { %v125_v31 = vpop.xlane.xlu1 %124 }
 0x1ed   :  { %525 = vrsqrt.f32 %v128_v30  ;;  %v127_v32 = vmul.f32 0.03125, %v125_v31 }
 0x1ef   :  { %v129_v33 = vadd.f32 1e-05, %v127_v32 }
 0x1f1   :  { %527 = vrsqrt.f32 %v129_v33 }
 0x1fa   :  { %v526_v34 = vpop.eup %525 }
 0x1fb   :  { %v132_v35 = vmul.f32 %v526_v34, %v116_v18  ;;  %v434_v18 = vld [vmem:[%s720_s8] ss:$0 sm:$0xff] }
 0x1fd   :  { %v141_v39 = vmul.f32 %v428_v36, %v132_v35 }
 0x1fe   :  { %v528_v37 = vpop.eup %527 }
 0x1ff   :  { %v133_v38 = vmul.f32 %v528_v37, %v117_v22  ;;  %v150_v42 = vadd.f32 %v429_v40, %v141_v39 }
 0x201   :  { %v142_v41 = vmul.f32 %v428_v36, %v133_v38 }
 0x203   :  { %v151_v43 = vadd.f32 %v429_v40, %v142_v41 }
 0x205   :  { %v152_v45 = vpack.c.bf16 %v151_v43, %v150_v42 }
 0x207   :  { %478 = vmatmul.mubr.msk.bf16.vlgmr.msra.gmra.mxu0 %vm60_vm1, %v152_v45 }
 0x208   :  { %482 = vmatpush3.bf16.msra.mxu0 %v515_v44  ;;  %485 = vmatprep.mubr.msk.bf16.mxu0 %vm534_vm0, %v533_v0 }
 0x209   :  { %483 = vmatprep.subr.bf16.mxu0 %v533_v0 }
 0x20c   :  { %484 = vmatpush3.bf16.msra.mxu0 %v516_v46 }
 0x20f   :  { %486 = vmatmul.mubr.msk.bf16.vlgmr.msra.gmra.mxu0 %vm60_vm1, %v152_v45 }
 0x2c7   :  { %v213_v56 = vpop.f32.mrf.mxu0 }
 0x2c8   :  { %v214_v57 = vadd.f32 %v430_v55, %v213_v56 }
 0x2c9   :  { %v479_v58 = vpop.f32.mrf.mxu0 }
 0x2ca   :  { %v286_v59 = vmul.f32 0.044715, %v214_v57  ;;  %v284_v16 = vmul.f32 0.5, %v214_v57 }
 0x2cb   :  { %v216_v60 = vpop.f32.mrf.mxu0 }
 0x2cc   :  { %v288_v61 = vmul.f32 %v286_v59, %v214_v57  ;;  %v217_v62 = vadd.f32 %v430_v55, %v216_v60 }
 0x2cd   :  { %v480_v63 = vpop.f32.mrf.mxu0 }
 0x2ce   :  { %v287_v1 = vmul.f32 0.044715, %v217_v62  ;;  %v290_v2 = vmul.f32 %v288_v61, %v214_v57  ;;  %v285_v20 = vmul.f32 0.5, %v217_v62 }
 0x2cf   :  { %v277_v0 = vpop.f32.mrf.mxu0 }
 0x2d0   :  { %v289_v3 = vmul.f32 %v287_v1, %v217_v62  ;;  %v292_v4 = vadd.f32 %v290_v2, %v214_v57  ;;  %v278_v22 = vadd.f32 %v434_v18, %v277_v0 }
 0x2d1   :  { %v487_v5 = vpop.f32.mrf.mxu0 }
 0x2d2   :  { %v294_v6 = vmul.f32 0.7978846, %v292_v4  ;;  %v291_v7 = vmul.f32 %v289_v3, %v217_v62 }
 0x2d3   :  { %v280_v9 = vpop.f32.mrf.mxu0 }
 0x2d4   :  { %529 = vtanh.f32 %v294_v6  ;;  %v293_v10 = vadd.f32 %v291_v7, %v217_v62  ;;  %v281_v23 = vadd.f32 %v434_v18, %v280_v9 }
 0x2d5   :  { %v488_v11 = vpop.f32.mrf.mxu0 }
 0x2d6   :  { %v295_v12 = vmul.f32 0.7978846, %v293_v10 }
 0x2d8   :  { %531 = vtanh.f32 %v295_v12 }
 0x2e1   :  { %v530_v14 = vpop.eup %529 }
 0x2e2   :  { %v298_v15 = vadd.f32 1.0, %v530_v14 }
 0x2e4   :  { %v300_v19 = vmul.f32 %v298_v15, %v284_v16 }
 0x2e5   :  { %v532_v17 = vpop.eup %531 }
 0x2e6   :  { %v299_v21 = vadd.f32 1.0, %v532_v17  ;;  %v302_v25 = vmul.f32 %v300_v19, %v278_v22 }
 0x2e8   :  { %v301_v24 = vmul.f32 %v299_v21, %v285_v20 }
 0x2ea   :  { %v303_v26 = vmul.f32 %v301_v24, %v281_v23 }
 0x2ec   :  { %v304_v27 = vpack.c.bf16 %v303_v26, %v302_v25 }
 0x2ee   :  { %506 = vmatmul.mubr.bf16.vlgmr.msra.gmra.mxu1 %v304_v27 }
 0x3ae   :  { %v410_v29 = vpop.f32.mrf.mxu1 }
 0x3af   :  { %v411_v30 = vadd.f32 %v438_v28, %v410_v29 }
 0x3b0   :  { %v507_v31 = vpop.f32.mrf.mxu1 }
 0x3b1   :  { %v417_v32 = vadd.f32 %v411_v30, %v621_v8 }
 0x3b2   :  { %v413_v33 = vpop.f32.mrf.mxu1 }
 0x3b3   :  { %419 = vst.msk [vmem:[%s722_s11] sm:$0xff] %vm60_vm1, %v417_v32  ;;  %v414_v34 = vadd.f32 %v438_v28, %v413_v33 }
 0x3b4   :  { %v508_v35 = vpop.f32.mrf.mxu1 }
 0x3b5   :  { %v418_v36 = vadd.f32 %v414_v34, %v628_v13 }
 0x3b7   :  { %420 = vst.msk [vmem:[%s722_s11 + $0x8] sm:$0xff] %vm60_vm1, %v418_v36 }

// kernel: _lambda_.13
= control target key start
LH: loop header
LB: loop body
LE: loop exit
PB: predicated region body
PF: predicated region fallthrough
CT: control target
= control target key end

     0   :  { %vm21_vm0 = vcmask 261120   ;;  %s252_s0 = inlined_call_operand.vmem [shape: f32[16,32], index: 0, kind: input, shape index: {}]   ;;  %s253_s1 = inlined_call_operand.vmem [shape: f32[1,32], index: 1, kind: input, shape index: {}]   ;;  %s254_s2 = inlined_call_operand.vmem [shape: f32[1,32], index: 2, kind: input, shape index: {}]   ;;  %s255_s3 = inlined_call_operand.vmem [shape: bf16[32,64], index: 3, kind: input, shape index: {}]   ;;  %s256_s4 = inlined_call_operand.hbm [shape: f32[16,64], index: 4, kind: output, shape index: {}]  }
   0x1   :  { %v19_v0 = vld [vmem:[%s252_s0] sm:$0xff]  ;;  %v20_v1 = vld [vmem:[%s252_s0 + $0x8] sm:$0xff] }
   0x2   :  { %v22_v2 = vsel %vm21_vm0, %v19_v0, 0.0 }
   0x3   :  { %23 = vadd.xlane.f32.xlu0 %v22_v2 }
   0x4   :  { %9 = vsyncpa [#allocation3], 0  ;;  %v25_v3 = vsel %vm21_vm0, %v20_v1, 0.0  ;;  %v168_v14 = vld [vmem:[%s255_s3 + $0x8] sm:$0xff]   ;;  %v196_v15 = vmov 0.0   ;;  %vm197_vm1 = vmmov 0  }
   0x5   :  { %155 = vmatprep.subr.bf16.mxu0 %v196_v15  ;;  %159 = vmatprep.mubr.msk.bf16.mxu0 %vm197_vm1, %v196_v15  ;;  %v169_v16 = vld [vmem:[%s255_s3] sm:$0xff]   ;;  %vm128_vm2 = vcmask 523264   ;;  %s198_s25 = smov [#allocation2]  }
   0x6   :  { %156 = vmatpush3.bf16.msra.mxu0 %v168_v14  ;;  %v147_v25 = vld [vmem:[%s253_s1] ss:$0 sm:$0xff]  ;;  %s136_s26 = sshll.u32 %s198_s25, 4  ;;  %s137_s26 = int_to_ptr.vmem [resolvable:$true] %s136_s26 }
   0x7   :  { %26 = vadd.xlane.f32.xlu0 %v25_v3  ;;  %157 = vmatprep.subr.bf16.mxu0 %v196_v15  ;;  %v148_v29 = vld [vmem:[%s254_s2] ss:$0 sm:$0xff]  ;;  %s174_s1 = scalar_lea.vmem %s137_s26, 256  ;;  %p179_p1 = scmp.lt.s32.totalorder %s137_s26, %s137_s26 }
   0x8   :  { %p175_p0 = scmp.ne.s32.totalorder %s137_s26, %s174_s1  ;;  %p180_p2 = scmp.lt.s32.totalorder %s174_s1, %s174_s1 }
   0xa   :  { %158 = vmatpush3.bf16.msra.mxu0 %v169_v16  ;;  %p181_p3 = por %p180_p2, %p179_p1 }
   0xc   :  { %p182_p4 = pnand %p181_p3, %p175_p0 }
  0x8c   :  { %v24_v4 = vpop.xlane.xlu0 %23 }
  0x8d   :  { %v29_v5 = vmul.f32 0.03125, %v24_v4 }
  0x8f   :  { %v31_v6 = vsub.f32 %v19_v0, %v29_v5 }
  0x90   :  { %v27_v7 = vpop.xlane.xlu0 %26 }
  0x91   :  { %v30_v8 = vmul.f32 0.03125, %v27_v7  ;;  %v33_v9 = vmul.f32 %v31_v6, %v31_v6 }
  0x93   :  { %v32_v10 = vsub.f32 %v20_v1, %v30_v8  ;;  %v35_v11 = vsel %vm21_vm0, %v33_v9, 0.0 }
  0x94   :  { %36 = vadd.xlane.f32.xlu1 %v35_v11 }
  0x95   :  { %v34_v12 = vmul.f32 %v32_v10, %v32_v10 }
  0x97   :  { %v38_v13 = vsel %vm21_vm0, %v34_v12, 0.0 }
  0x98   :  { %39 = vadd.xlane.f32.xlu1 %v38_v13 }
 0x11d   :  { %v37_v17 = vpop.xlane.xlu1 %36 }
 0x11e   :  { %v41_v18 = vmul.f32 0.03125, %v37_v17 }
 0x120   :  { %v43_v19 = vadd.f32 1e-05, %v41_v18 }
 0x121   :  { %v40_v20 = vpop.xlane.xlu1 %39 }
 0x122   :  { %170 = vrsqrt.f32 %v43_v19  ;;  %v42_v21 = vmul.f32 0.03125, %v40_v20 }
 0x124   :  { %v44_v22 = vadd.f32 1e-05, %v42_v21 }
 0x126   :  { %172 = vrsqrt.f32 %v44_v22 }
 0x12f   :  { %v171_v23 = vpop.eup %170 }
 0x130   :  { %v47_v24 = vmul.f32 %v171_v23, %v31_v6 }
 0x132   :  { %v56_v28 = vmul.f32 %v147_v25, %v47_v24 }
 0x133   :  { %v173_v26 = vpop.eup %172 }
 0x134   :  { %v48_v27 = vmul.f32 %v173_v26, %v32_v10  ;;  %v65_v31 = vadd.f32 %v148_v29, %v56_v28 }
 0x136   :  { %v57_v30 = vmul.f32 %v147_v25, %v48_v27 }
 0x138   :  { %v66_v32 = vadd.f32 %v148_v29, %v57_v30 }
 0x13a   :  { %v67_v33 = vpack.c.bf16 %v66_v32, %v65_v31 }
 0x13c   :  { %160 = vmatmul.mubr.msk.bf16.vlgmr.msra.gmra.mxu0 %vm21_vm0, %v67_v33 }
 0x1fc   :  { %v121_v34 = vpop.f32.mrf.mxu0 }
 0x1fd   :  { %129 = vst.msk [vmem:[#allocation2] sm:$0xff] %vm128_vm2, %v121_v34 }
 0x1fe   :  { %v161_v35 = vpop.f32.mrf.mxu0 }
 0x200   :  { %v124_v36 = vpop.f32.mrf.mxu0 }
 0x201   :  { %130 = vst.msk [vmem:[#allocation2 + $0x8] sm:$0xff] %vm128_vm2, %v124_v36 }
 0x202   :  { %v162_v37 = vpop.f32.mrf.mxu0 }
 0x203   :  { %185 = shalt.err (!%p182_p4)
}
 0x204   :  { %s199_s2 = smov 128   ;;  %s200_s27 = smov 8  }
 0x205   :  { %142 = dma.vmem_to_hbm [thread:$0]  %s137_s26, 256, %s256_s4, [#allocation3], %s199_s2, %s199_s2, %s200_s27  }
 0x206   :  { %194 = dma.done.wait [#allocation3], 256  }
 0x207   :  { %195 = vsyncadd [#allocation3], 4294967040 }
 0x208   :  { %146 = vsyncpa [#allocation3], 1 }

// kernel: _lambda_.8
= control target key start
LH: loop header
LB: loop body
LE: loop exit
PB: predicated region body
PF: predicated region fallthrough
CT: control target
= control target key end

     0   :  { %s1605_s24 = smov 0   ;;  %s1607_s25 = smov 0   ;;  %s1841_s0 = inlined_call_operand.vmem [shape: f32[2,8,32], index: 0, kind: input, shape index: {}]   ;;  %s1842_s1 = inlined_call_operand.vmem [shape: f32[2,8,32], index: 1, kind: input, shape index: {}]   ;;  %s1843_s2 = inlined_call_operand.vmem [shape: f32[2,8,32], index: 2, kind: input, shape index: {}]   ;;  %s1844_s3 = inlined_call_operand.vmem [shape: f32[8,8], index: 3, kind: input, shape index: {}]   ;;  %s1845_s4 = inlined_call_operand.vmem [shape: f32[8,8], index: 4, kind: input, shape index: {}]   ;;  %s1846_s5 = inlined_call_operand.vmem [shape: f32[8,8], index: 5, kind: input, shape index: {}]   ;;  %s1847_s6 = inlined_call_operand.vmem [shape: f32[8,8], index: 6, kind: input, shape index: {}]   ;;  %s1848_s7 = inlined_call_operand.vmem [shape: f32[2,8,32], index: 7, kind: output, shape index: {}]  }
   0x1   :  { %s1609_s26 = smov 0  }
   0x2 LB: > { %s36_s27 = sadd.s32 1, %s1544_s25  ;;  %p1382_p0 = scmp.ge.s32.totalorder %s1548_s26, 1  ;;  %s1548_s26 = sphi %s1609_s26, %s17_s26   ;;  %s1544_s25 = sphi %s1607_s25, %s1850_s25   ;;  %s1540_s24 = sphi %s1605_s24, %s1849_s24  }
   0x3   : > { %p38_p1 = scmp.ge.s32.totalorder %s36_s27, 2  ;;  %p326_p2 = scmp.lt.s32.totalorder %s1548_s26, 3 }
   0x5   : > { %s1852_s27 = smov (%p38_p1, %s36_s27), 0  ;;  %p327_p3 = pnand %p1382_p0, %p326_p2 }
   0x6   : > { %p392_p4 = scmp.lt.s32.totalorder (!%p327_p3), %s1540_s24, 1  ;;  %s1551_s12 = smov (!%p327_p3), 124  }
   0x7   : > { %330 = sbr.rel (%p327_p3) target bundleno = 1536 (0x600), region = 48  ;;  %s1553_s13 = smov (!%p327_p3), 4  }
   0x8   : > { %s1554_s14 = smov (!%p327_p3), 116   ;;  %s1555_s15 = smov (!%p327_p3), 108  }
   0x9   : > { %s1556_s16 = smov (!%p327_p3), 100   ;;  %s1557_s19 = smov (!%p327_p3), 8  }
   0xa   : > { %s1558_s30 = smov (!%p327_p3), 16   ;;  %s1562_s9 = smov (!%p327_p3), 112  }
   0xb   : > { %s1563_s10 = smov (!%p327_p3), 104  }
   0xc   : > { %s1854_s24 = smov (!%p392_p4, %s1540_s24), 1  ;;  %v1550_v0 = vmov 0.0   ;;  %vm450_vm0 = vcmask 64512   ;;  %vm1552_vm1 = vmmov 0   ;;  %v464_v3 = vld [vmem:[%s1846_s5] sm:$0xff]  ;;  %vm485_vm2 = vcmask 31744  }
   0xd   : > { %s1623_s28 = sshll.u32 %s1854_s24, 3  ;;  %1413 = vmatprep.subr.bf16.mxu0 %v1550_v0  ;;  %1419 = vmatprep.subr.bf16.mxu1 %v1550_v0  ;;  %451 = vst.msk [vmem:[#allocation4] sm:$0xff] %vm450_vm0, %v1550_v0  ;;  %452 = vst.msk [vmem:[#allocation4 + $0x8] sm:$0xff] %vm450_vm0, %v1550_v0  ;;  %v465_v6 = vld [vmem:[%s1847_s6] sm:$0xff]  ;;  %vm441_vm3 = vcmask 7168   ;;  %v466_v41 = vlaneseq  ;;  %v1561_v54 = vmov 0  }
   0xe   : > { %s405_s8 = scalar_lea.vmem %s1842_s1, %s1623_s28  ;;  %s398_s11 = scalar_lea.vmem %s1841_s0, %s1623_s28  ;;  %453 = vst.msk [vmem:[#allocation4 + $0x10] sm:$0xff] %vm450_vm0, %v1550_v0  ;;  %454 = vst.msk [vmem:[#allocation4 + $0x18] sm:$0xff] %vm450_vm0, %v1550_v0  ;;  %1415 = vmatprep.mubr.msk.bf16.mxu0 %vm1552_vm1, %v1550_v0  ;;  %1421 = vmatprep.mubr.msk.bf16.mxu1 %vm1552_vm1, %v1550_v0  ;;  %v463_v12 = vld [vmem:[%s1845_s4] sm:$0xff]  ;;  %v1560_v40 = vmov -1e+30   ;;  %vm587_vm5 = vcmask 1043456  }
   0xf   : > { %v1643_v1 = vld [vmem:[%s405_s8] sm:$0xff]  ;;  %s1559_s8 = smov 24   ;;  %442 = vst.msk [vmem:[#allocation2] sm:$0xff] %vm441_vm3, %v1560_v40  ;;  %443 = vst.msk [vmem:[#allocation2 + $0x8] sm:$0xff] %vm441_vm3, %v1560_v40  ;;  %v1711_v42 = vshrl.u32 %v466_v41, 7  ;;  %v1713_v43 = vand.u32 127, %v466_v41  ;;  %1500 = vset.pattern.permute.xlu1 %v1561_v54  ;;  %1501 = vset.pattern.permute.xlu0 %v1561_v54  ;;  %s435_s17 = scalar_lea.vmem %s1848_s7, %s1623_s28 }
  0x10   : > { %v1645_v2 = vld [vmem:[%s398_s11] sm:$0xff]  ;;  %492 = vrot.lane.b32.xlu0 %v1643_v1, %s1551_s12  ;;  %v499_v9 = vmul.f32 %v1643_v1, %v464_v3  ;;  %444 = vst.msk [vmem:[#allocation2 + $0x10] sm:$0xff] %vm441_vm3, %v1560_v40  ;;  %445 = vst.msk [vmem:[#allocation2 + $0x18] sm:$0xff] %vm441_vm3, %v1560_v40  ;;  %vm1200_vm6 = vcmask 130048   ;;  %vm1202_vm7 = vcmask 195584   ;;  %vm1204_vm8 = vcmask 261120  }
  0x11   : > { %479 = vrot.lane.b32.xlu1 %v1645_v2, %s1551_s12  ;;  %v462_v14 = vld [vmem:[%s1844_s3] sm:$0xff]  ;;  %446 = vst.msk [vmem:[#allocation3] sm:$0xff] %vm441_vm3, %v1550_v0  ;;  %447 = vst.msk [vmem:[#allocation3 + $0x8] sm:$0xff] %vm441_vm3, %v1550_v0  ;;  %vm474_vm4 = vcmp.le.s32.totalorder %v1713_v43, %v1711_v42 }
  0x12   : > { %v487_v22 = vmul.f32 %v1645_v2, %v462_v14  ;;  %448 = vst.msk [vmem:[#allocation3 + $0x10] sm:$0xff] %vm441_vm3, %v1550_v0  ;;  %449 = vst.msk [vmem:[#allocation3 + $0x18] sm:$0xff] %vm441_vm3, %v1550_v0 }
  0x14   : > { %495 = vrot.lane.b32.xlu0 %v1643_v1, %s1553_s13 }
  0x15   : > { %482 = vrot.lane.b32.xlu1 %v1645_v2, %s1553_s13  ;;  %s412_s13 = scalar_lea.vmem %s1843_s2, %s1623_s28 }
  0x17   : > { %v1057_v42 = vld [vmem:[#allocation2 + $0x18] sm:$0xff] }
  0x18   : > { %650 = vrot.lane.b32.xlu0 %v1643_v1, %s1554_s14 }
  0x19   : > { %634 = vrot.lane.b32.xlu1 %v1645_v2, %s1554_s14  ;;  %s1564_s14 = smov 120  }
  0x1c   : > { %820 = vrot.lane.b32.xlu0 %v1643_v1, %s1555_s15 }
  0x1d   : > { %805 = vrot.lane.b32.xlu1 %v1645_v2, %s1555_s15 }
  0x20   : > { %988 = vrot.lane.b32.xlu0 %v1643_v1, %s1556_s16 }
  0x21   : > { %973 = vrot.lane.b32.xlu1 %v1645_v2, %s1556_s16 }
  0x25   : > { %655 = vrot.lane.b32.xlu1 %v464_v3, %s1557_s19 }
  0x82   : > { %v493_v4 = vpop.permute.xlu0 %492 }
  0x83   : > { %v480_v5 = vpop.permute.xlu1 %479 }
  0x86   : > { %v496_v7 = vpop.permute.xlu0 %495 }
  0x87   : > { %v483_v8 = vpop.permute.xlu1 %482  ;;  %v498_v10 = vsel %vm485_vm2, %v493_v4, %v496_v7 }
  0x88   : > { %v500_v11 = vmul.f32 %v498_v10, %v465_v6  ;;  %v486_v13 = vsel %vm485_vm2, %v480_v5, %v483_v8 }
  0x89   : > { %v488_v19 = vmul.f32 %v486_v13, %v463_v12 }
  0x8a   : > { %v651_v15 = vpop.permute.xlu0 %650  ;;  %v501_v17 = vadd.f32 %v500_v11, %v499_v9 }
  0x8b   : > { %v635_v16 = vpop.permute.xlu1 %634  ;;  %v653_v18 = vsel %vm485_vm2, %v651_v15, %v493_v4  ;;  %v489_v26 = vadd.f32 %v488_v19, %v487_v22 }
  0x8c   : > { %v659_v20 = vmul.f32 %v653_v18, %v465_v6  ;;  %v502_v21 = vpack.c.bf16 %v501_v17, %v501_v17  ;;  %v637_v29 = vsel %vm485_vm2, %v635_v16, %v480_v5  ;;  %v477_v18 = vld [vmem:[%s412_s13] sm:$0xff] }
  0x8d   : > { %v490_v28 = vpack.c.bf16 %v489_v26, %v489_v26  ;;  %v643_v30 = vmul.f32 %v637_v29, %v463_v12 }
  0x8e   : > { %661 = vrot.lane.b32.xlu1 %v659_v20, %s1557_s19  ;;  %v509_v23 = vsel %vm450_vm0, %v502_v21, 0  ;;  %v821_v31 = vpop.permute.xlu0 %820  ;;  %v1745_v20 = vpack.c.bf16 %v477_v18, %v477_v18 }
  0x8f   : > { %v806_v24 = vpop.permute.xlu1 %805  ;;  %1414 = vmatpush3.bf16.xpose.msra.mxu0 %v509_v23  ;;  %v823_v32 = vsel %vm485_vm2, %v821_v31, %v651_v15 }
  0x90   : > { %v808_v25 = vsel %vm485_vm2, %v806_v24, %v635_v16  ;;  %1431 = vmatprep.subr.bf16.mxu0 %v1550_v0  ;;  %v828_v33 = vmul.f32 %v823_v32, %v465_v6  ;;  %v589_v22 = vsel %vm587_vm5, %v1745_v20, 0 }
  0x91   : > { %v813_v27 = vmul.f32 %v808_v25, %v463_v12  ;;  %1420 = vmatpush3.bf16.msra.mxu1 %v589_v22 }
  0x92   : > { %639 = vrot.lane.b32.xlu1 %v462_v14, %s1557_s19  ;;  %v989_v34 = vpop.permute.xlu0 %988  ;;  %1425 = vmatprep.subr.bf16.mxu1 %v1550_v0 }
  0x93   : > { %v991_v35 = vsel %vm485_vm2, %v989_v34, %v821_v31  ;;  %v974_v37 = vpop.permute.xlu1 %973 }
  0x94   : > { %v996_v36 = vmul.f32 %v991_v35, %v465_v6  ;;  %v976_v38 = vsel %vm485_vm2, %v974_v37, %v806_v24  ;;  %v1727_v6 = vld [vmem:[#allocation2] sm:$0xff] }
  0x95   : > { %v981_v39 = vmul.f32 %v976_v38, %v463_v12 }
  0x96   : > { %824 = vrot.lane.b32.xlu1 %v464_v3, %s1558_s30  ;;  %1416 = vmatmul.mubr.msk.bf16.vlgmr.msra.gmra.mxu0 %vm450_vm0, %v490_v28 }
  0x97   : > { %1433 = vmatprep.mubr.msk.bf16.mxu0 %vm1552_vm1, %v1550_v0  ;;  %v656_v44 = vpop.permute.xlu1 %655 }
  0x98   : > { %v658_v5 = vmul.f32 %v656_v44, %v1643_v1 }
  0x9a   : > { %645 = vrot.lane.b32.xlu1 %v643_v30, %s1557_s19 }
  0x9e   : > { %830 = vrot.lane.b32.xlu1 %v828_v33, %s1558_s30 }
  0xa2   : > { %809 = vrot.lane.b32.xlu1 %v462_v14, %s1558_s30 }
  0xa6   : > { %992 = vrot.lane.b32.xlu1 %v464_v3, %s1559_s8 }
  0xaa   : > { %998 = vrot.lane.b32.xlu1 %v996_v36, %s1559_s8 }
  0xae   : > { %977 = vrot.lane.b32.xlu1 %v462_v14, %s1559_s8 }
  0xb2   : > { %983 = vrot.lane.b32.xlu1 %v981_v39, %s1559_s8 }
 0x100   : > { %v662_v46 = vpop.permute.xlu1 %661 }
 0x101   : > { %v664_v8 = vadd.f32 %v662_v46, %v658_v5 }
 0x103   : > { %v665_v14 = vpack.c.bf16 %v664_v8, %v664_v8 }
 0x104   : > { %v640_v52 = vpop.permute.xlu1 %639 }
 0x105   : > { %v642_v9 = vmul.f32 %v640_v52, %v1645_v2 }
 0x108   : > { %v825_v53 = vpop.permute.xlu1 %824 }
 0x109   : > { %v827_v56 = vmul.f32 %v825_v53, %v1643_v1 }
 0x10c   : > { %v646_v55 = vpop.permute.xlu1 %645 }
 0x10d   : > { %v648_v15 = vadd.f32 %v646_v55, %v642_v9 }
 0x10f   : > { %v649_v21 = vpack.c.bf16 %v648_v15, %v648_v15 }
 0x110   : > { %v831_v57 = vpop.permute.xlu1 %830 }
 0x111   : > { %v833_v58 = vadd.f32 %v831_v57, %v827_v56 }
 0x113   : > { %v834_v59 = vpack.c.bf16 %v833_v58, %v833_v58 }
 0x114   : > { %v810_v60 = vpop.permute.xlu1 %809 }
 0x118   : > { %v993_v61 = vpop.permute.xlu1 %992 }
 0x119   : > { %v995_v62 = vmul.f32 %v993_v61, %v1643_v1  ;;  %v812_v1 = vmul.f32 %v810_v60, %v1645_v2 }
 0x11c   : > { %v999_v63 = vpop.permute.xlu1 %998 }
 0x11d   : > { %v1001_v3 = vadd.f32 %v999_v63, %v995_v62  ;;  %v720_v63 = vld [vmem:[#allocation2 + $0x8] sm:$0xff] }
 0x11f   : > { %v1002_v4 = vpack.c.bf16 %v1001_v3, %v1001_v3 }
 0x120   : > { %v978_v11 = vpop.permute.xlu1 %977 }
 0x121   : > { %v980_v17 = vmul.f32 %v978_v11, %v1645_v2 }
 0x124   : > { %v984_v19 = vpop.permute.xlu1 %983 }
 0x125   : > { %v986_v24 = vadd.f32 %v984_v19, %v980_v17 }
 0x127   : > { %v987_v25 = vpack.c.bf16 %v986_v24, %v986_v24 }
 0x156   : > { %v545_v45 = vpop.f32.mrf.mxu0 }
 0x157   : > { %v551_v47 = vsel %vm474_vm4, %v545_v45, -1e+30 }
 0x158   : > { %v1417_v48 = vpop.f32.mrf.mxu0  ;;  %v553_v49 = vsel %vm450_vm0, %v551_v47, -inf }
 0x159   : > { %554 = vmax.xlane.f32.xlu0 %v553_v49 }
 0x15a   : > { %v548_v50 = vpop.f32.mrf.mxu0 }
 0x15c   : > { %v1418_v51 = vpop.f32.mrf.mxu0 }
 0x16f   : > { %815 = vrot.lane.b32.xlu0 %v813_v27, %s1558_s30 }
 0x173   : > { %839 = vrot.lane.b32.xlu0 %v834_v59, %s1562_s9 }
 0x177   : > { %1007 = vrot.lane.b32.xlu0 %v1002_v4, %s1563_s10 }
 0x1e2   : > { %v555_v7 = vpop.xlane.xlu0 %554 }
 0x1e3   : > { %v1731_v10 = vmax.f32 %v1727_v6, %v555_v7  ;;  %v889_v7 = vld [vmem:[#allocation2 + $0x10] sm:$0xff] }
 0x1e5   : > { %v557_v12 = vsub.f32 %v1727_v6, %v1731_v10  ;;  %633 = vst.msk [vmem:[#allocation2] sm:$0xff] %vm441_vm3, %v1731_v10  ;;  %562 = vperm.xlu1 %1500, %v1731_v10  }
 0x1e6   : > { %v816_v13 = vpop.permute.xlu0 %815 }
 0x1e7   : > { %v818_v16 = vadd.f32 %v816_v13, %v812_v1 }
 0x1e9   : > { %670 = vrot.lane.b32.xlu1 %v665_v14, %s1564_s14  ;;  %v819_v23 = vpack.c.bf16 %v818_v16, %v818_v16 }
 0x1ea   : > { %v840_v32 = vpop.permute.xlu0 %839 }
 0x1eb   : > { %v845_v34 = vsel %vm450_vm0, %v840_v32, 0 }
 0x1ed   : > { %667 = vrot.lane.b32.xlu1 %v649_v21, %s1564_s14 }
 0x1ee   : > { %v1008_v35 = vpop.permute.xlu0 %1007 }
 0x1ef   : > { %v1013_v37 = vsel %vm450_vm0, %v1008_v35, 0 }
 0x1f1   : > { %836 = vrot.lane.b32.xlu1 %v819_v23, %s1562_s9 }
 0x1f5   : > { %1004 = vrot.lane.b32.xlu1 %v987_v25, %s1563_s10 }
 0x260   : > { %v563_v2 = vpop.permute.xlu1 %562 }
 0x261   : > { %v565_v26 = vsub.f32 %v551_v47, %v563_v2 }
 0x263   : > { %v566_v27 = vmul.f32 1.442695, %v565_v26 }
 0x264   : > { %v671_v29 = vpop.permute.xlu1 %670 }
 0x265   : > { %1502 = vpow2.f32 %v566_v27  ;;  %v676_v31 = vsel %vm450_vm0, %v671_v29, 0 }
 0x268   : > { %v668_v33 = vpop.permute.xlu1 %667 }
 0x26c   : > { %v837_v36 = vpop.permute.xlu1 %836 }
 0x270   : > { %v1005_v38 = vpop.permute.xlu1 %1004 }
 0x272   : > { %v1753_v28 = vpop.eup %1502 }
 0x273   : > { %v583_v30 = vpack.c.bf16 %v1753_v28, %v1753_v28  ;;  %v570_v14 = vsel %vm450_vm0, %v1753_v28, 0.0  ;;  %v558_v28 = vmul.f32 1.442695, %v557_v12 }
 0x275   : > { %1422 = vmatmul.mubr.msk.bf16.vlgmr.msra.gmra.mxu1 %vm450_vm0, %v583_v30 }
 0x276   : > { %1426 = vmatpush3.bf16.xpose.msra.mxu1 %v676_v31  ;;  %1427 = vmatprep.mubr.msk.bf16.mxu1 %vm1552_vm1, %v1550_v0 }
 0x277   : > { %1437 = vmatprep.subr.bf16.mxu1 %v1550_v0 }
 0x27d   : > { %1428 = vmatmul.mubr.msk.bf16.vlgmr.msra.gmra.mxu1 %vm450_vm0, %v668_v33 }
 0x27e   : > { %1438 = vmatpush3.bf16.xpose.msra.mxu1 %v845_v34  ;;  %1439 = vmatprep.mubr.msk.bf16.mxu1 %vm1552_vm1, %v1550_v0 }
 0x27f   : > { %1449 = vmatprep.subr.bf16.mxu1 %v1550_v0 }
 0x285   : > { %1440 = vmatmul.mubr.msk.bf16.vlgmr.msra.gmra.mxu1 %vm450_vm0, %v837_v36 }
 0x286   : > { %1450 = vmatpush3.bf16.xpose.msra.mxu1 %v1013_v37  ;;  %1451 = vmatprep.mubr.msk.bf16.mxu1 %vm1552_vm1, %v1550_v0 }
 0x28d   : > { %1452 = vmatmul.mubr.msk.bf16.vlgmr.msra.gmra.mxu1 %vm450_vm0, %v1005_v38 }
 0x335   : > { %v1772_v39 = vpop.f32.mrf.mxu1 }
 0x337   : > { %v1423_v40 = vpop.f32.mrf.mxu1 }
 0x339   : > { %v628_v41 = vpop.f32.mrf.mxu1 }
 0x33b   : > { %v1424_v44 = vpop.f32.mrf.mxu1 }
 0x33d   : > { %v712_v45 = vpop.f32.mrf.mxu1 }
 0x33e   : > { %v718_v46 = vsel %vm474_vm4, %v712_v45, -1e+30 }
 0x33f   : > { %v1429_v47 = vpop.f32.mrf.mxu1  ;;  %v721_v48 = vsel %vm450_vm0, %v718_v46, -inf }
 0x340   : > { %722 = vmax.xlane.f32.xlu0 %v721_v48 }
 0x341   : > { %v715_v49 = vpop.f32.mrf.mxu1 }
 0x343   : > { %v1430_v50 = vpop.f32.mrf.mxu1 }
 0x345   : > { %v881_v51 = vpop.f32.mrf.mxu1 }
 0x346   : > { %v887_v52 = vsel %vm474_vm4, %v881_v51, -1e+30  ;;  %v737_v51 = vld [vmem:[#allocation3 + $0x8] sm:$0xff] }
 0x347   : > { %v1441_v53 = vpop.f32.mrf.mxu1  ;;  %v890_v54 = vsel %vm450_vm0, %v887_v52, -inf }
 0x348   : > { %891 = vmax.xlane.f32.xlu1 %v890_v54 }
 0x349   : > { %v884_v55 = vpop.f32.mrf.mxu1 }
 0x34a   : > { %v906_v55 = vld [vmem:[#allocation3 + $0x10] sm:$0xff] }
 0x34b   : > { %v1442_v56 = vpop.f32.mrf.mxu1 }
 0x34c   : > { %v576_v56 = vld [vmem:[#allocation4] sm:$0xff] }
 0x34d   : > { %v1049_v57 = vpop.f32.mrf.mxu1 }
 0x34e   : > { %v1055_v58 = vsel %vm474_vm4, %v1049_v57, -1e+30 }
 0x34f   : > { %v1453_v59 = vpop.f32.mrf.mxu1  ;;  %v1058_v60 = vsel %vm450_vm0, %v1055_v58, -inf }
 0x350   : > { %1059 = vmax.xlane.f32.xlu0 %v1058_v60 }
 0x351   : > { %v1052_v61 = vpop.f32.mrf.mxu1 }
 0x353   : > { %v1454_v62 = vpop.f32.mrf.mxu1 }
 0x3c9   : > { %v723_v3 = vpop.xlane.xlu0 %722 }
 0x3ca   : > { %v724_v4 = vmax.f32 %v720_v63, %v723_v3  ;;  %v1074_v3 = vld [vmem:[#allocation3 + $0x18] sm:$0xff] }
 0x3cc   : > { %v725_v5 = vsub.f32 %v720_v63, %v724_v4  ;;  %804 = vst.msk [vmem:[#allocation2 + $0x8] sm:$0xff] %vm441_vm3, %v724_v4  ;;  %730 = vperm.xlu0 %1501, %v724_v4  }
 0x3ce   : > { %v726_v33 = vmul.f32 1.442695, %v725_v5 }
 0x3d1   : > { %v892_v8 = vpop.xlane.xlu1 %891 }
 0x3d2   : > { %v893_v9 = vmax.f32 %v889_v7, %v892_v8 }
 0x3d4   : > { %v894_v11 = vsub.f32 %v889_v7, %v893_v9  ;;  %972 = vst.msk [vmem:[#allocation2 + $0x10] sm:$0xff] %vm441_vm3, %v893_v9  ;;  %899 = vperm.xlu1 %1500, %v893_v9  }
 0x3d6   : > { %v895_v35 = vmul.f32 1.442695, %v894_v11 }
 0x3d9   : > { %v1060_v43 = vpop.xlane.xlu0 %1059 }
 0x3da   : > { %v1061_v1 = vmax.f32 %v1057_v42, %v1060_v43 }
 0x3dc   : > { %v1062_v13 = vsub.f32 %v1057_v42, %v1061_v1  ;;  %1140 = vst.msk [vmem:[#allocation2 + $0x18] sm:$0xff] %vm441_vm3, %v1061_v1  ;;  %1067 = vperm.xlu1 %1500, %v1061_v1  }
 0x3de   : > { %v1063_v37 = vmul.f32 1.442695, %v1062_v13 }
 0x3e0   : > { %754 = vrot.lane.b32.xlu1 %v1745_v20, %s1564_s14 }
 0x3e4   : > { %922 = vrot.lane.b32.xlu1 %v1745_v20, %s1562_s9 }
 0x3e8   : > { %1090 = vrot.lane.b32.xlu1 %v1745_v20, %s1563_s10 }
 0x40c   : > { %571 = vadd.xlane.f32.xlu1 %v570_v14 }
 0x447   : > { %v731_v15 = vpop.permute.xlu0 %730 }
 0x448   : > { %v733_v16 = vsub.f32 %v718_v46, %v731_v15  ;;  %v568_v46 = vld [vmem:[#allocation3] sm:$0xff] }
 0x44a   : > { %v734_v17 = vmul.f32 1.442695, %v733_v16 }
 0x44c   : > { %1504 = vpow2.f32 %v734_v17  ;;  %v914_v17 = vld [vmem:[#allocation4 + $0x10] sm:$0xff] }
 0x44f   : > { %v900_v18 = vpop.permute.xlu1 %899 }
 0x450   : > { %v902_v19 = vsub.f32 %v887_v52, %v900_v18 }
 0x452   : > { %v903_v21 = vmul.f32 1.442695, %v902_v19 }
 0x454   : > { %1506 = vpow2.f32 %v903_v21 }
 0x457   : > { %v1068_v22 = vpop.permute.xlu1 %1067 }
 0x458   : > { %v1070_v23 = vsub.f32 %v1055_v58, %v1068_v22 }
 0x459   : > { %v1505_v24 = vpop.eup %1504 }
 0x45a   : > { %v1071_v25 = vmul.f32 1.442695, %v1070_v23  ;;  %v739_v2 = vsel %vm450_vm0, %v1505_v24, 0.0  ;;  %v752_v27 = vpack.c.bf16 %v1505_v24, %v1505_v24 }
 0x45b   : > { %v755_v26 = vpop.permute.xlu1 %754  ;;  %740 = vadd.xlane.f32.xlu0 %v739_v2  ;;  %v1082_v2 = vld [vmem:[#allocation4 + $0x18] sm:$0xff] }
 0x45c   : > { %1508 = vpow2.f32 %v1071_v25  ;;  %v760_v20 = vsel %vm587_vm5, %v755_v26, 0 }
 0x45d   : > { %1432 = vmatpush3.bf16.msra.mxu0 %v760_v20  ;;  %1510 = vpow2.f32 %v558_v28 }
 0x45e   : > { %1443 = vmatprep.subr.bf16.mxu0 %v1550_v0  ;;  %1512 = vpow2.f32 %v726_v33 }
 0x45f   : > { %v923_v29 = vpop.permute.xlu1 %922  ;;  %1514 = vpow2.f32 %v895_v35 }
 0x460   : > { %1434 = vmatmul.mubr.msk.bf16.vlgmr.msra.gmra.mxu0 %vm450_vm0, %v752_v27  ;;  %v928_v30 = vsel %vm587_vm5, %v923_v29, 0  ;;  %1516 = vpow2.f32 %v1063_v37 }
 0x461   : > { %v1507_v31 = vpop.eup %1506  ;;  %1444 = vmatpush3.bf16.msra.mxu0 %v928_v30  ;;  %1445 = vmatprep.mubr.msk.bf16.mxu0 %vm1552_vm1, %v1550_v0 }
 0x462   : > { %v908_v32 = vsel %vm450_vm0, %v1507_v31, 0.0  ;;  %1455 = vmatprep.subr.bf16.mxu0 %v1550_v0  ;;  %v921_v6 = vpack.c.bf16 %v1507_v31, %v1507_v31 }
 0x463   : > { %909 = vadd.xlane.f32.xlu1 %v908_v32  ;;  %v1091_v34 = vpop.permute.xlu1 %1090 }
 0x464   : > { %v1096_v10 = vsel %vm587_vm5, %v1091_v34, 0 }
 0x468   : > { %1446 = vmatmul.mubr.msk.bf16.vlgmr.msra.gmra.mxu0 %vm450_vm0, %v921_v6 }
 0x469   : > { %v1509_v12 = vpop.eup %1508  ;;  %1456 = vmatpush3.bf16.msra.mxu0 %v1096_v10  ;;  %1457 = vmatprep.mubr.msk.bf16.mxu0 %vm1552_vm1, %v1550_v0 }
 0x46a   : > { %v1076_v36 = vsel %vm450_vm0, %v1509_v12, 0.0  ;;  %v1089_v38 = vpack.c.bf16 %v1509_v12, %v1509_v12  ;;  %v1511_v40 = vpop.eup %1510 }
 0x46b   : > { %1077 = vadd.xlane.f32.xlu1 %v1076_v36  ;;  %v1513_v41 = vpop.eup %1512  ;;  %v569_v0 = vmul.f32 %v1511_v40, %v568_v46 }
 0x46c   : > { %v1515_v44 = vpop.eup %1514  ;;  %v738_v52 = vmul.f32 %v1513_v41, %v737_v51 }
 0x46d   : > { %v1517_v45 = vpop.eup %1516  ;;  %v907_v57 = vmul.f32 %v1515_v44, %v906_v55 }
 0x46e   : > { %v1075_v4 = vmul.f32 %v1517_v45, %v1074_v3 }
 0x470   : > { %1458 = vmatmul.mubr.msk.bf16.vlgmr.msra.gmra.mxu0 %vm450_vm0, %v1089_v38 }
 0x471   : > { %579 = vperm.xlu0 %1501, %v1511_v40  }
 0x475   : > { %748 = vperm.xlu0 %1501, %v1513_v41  }
 0x47c   : > { %917 = vperm.xlu1 %1500, %v1515_v44  }
 0x480   : > { %1085 = vperm.xlu1 %1500, %v1517_v45  }
 0x495   : > { %v572_v47 = vpop.xlane.xlu1 %571 }
 0x496   : > { %v573_v48 = vadd.f32 %v572_v47, %v569_v0 }
 0x498   : > { %575 = vst.msk [vmem:[#allocation3] sm:$0xff] %vm441_vm3, %v573_v48 }
 0x49f   : > { %v1144_v49 = vld [vmem:[#allocation3] sm:$0xff] }
 0x4a0   : > { %1518 = vrcp.f32 %v1144_v49 }
 0x4ad   : > { %v1519_v50 = vpop.eup %1518 }
 0x4ae   : > { %1149 = vperm.xlu0 %1501, %v1519_v50  }
 0x4e4   : > { %v741_v53 = vpop.xlane.xlu0 %740 }
 0x4e5   : > { %v742_v54 = vadd.f32 %v741_v53, %v738_v52 }
 0x4e7   : > { %743 = vst.msk [vmem:[#allocation3 + $0x8] sm:$0xff] %vm441_vm3, %v742_v54 }
 0x4ec   : > { %v910_v58 = vpop.xlane.xlu1 %909  ;;  %v580_v59 = vpop.permute.xlu0 %579 }
 0x4ed   : > { %v911_v60 = vadd.f32 %v910_v58, %v907_v57  ;;  %v582_v61 = vmul.f32 %v580_v59, %v576_v56 }
 0x4ee   : > { %v1154_v62 = vld [vmem:[#allocation3 + $0x8] sm:$0xff] }
 0x4ef   : > { %912 = vst.msk [vmem:[#allocation3 + $0x10] sm:$0xff] %vm441_vm3, %v911_v60  ;;  %v631_v63 = vadd.f32 %v1772_v39, %v582_v61  ;;  %1520 = vrcp.f32 %v1154_v62  ;;  %v745_v39 = vld [vmem:[#allocation4 + $0x8] sm:$0xff] }
 0x4f0   : > { %v749_v1 = vpop.permute.xlu0 %748 }
 0x4f1   : > { %632 = vst.msk [vmem:[#allocation4] sm:$0xff] %vm450_vm0, %v631_v63  ;;  %v751_v13 = vmul.f32 %v749_v1, %v745_v39 }
 0x4f4   : > { %v1078_v5 = vpop.xlane.xlu1 %1077 }
 0x4f5   : > { %v1079_v7 = vadd.f32 %v1078_v5, %v1075_v4 }
 0x4f6   : > { %v1165_v8 = vld [vmem:[#allocation3 + $0x10] sm:$0xff] }
 0x4f7   : > { %1080 = vst.msk [vmem:[#allocation3 + $0x18] sm:$0xff] %vm441_vm3, %v1079_v7  ;;  %1522 = vrcp.f32 %v1165_v8 }
 0x4f8   : > { %v918_v18 = vpop.permute.xlu1 %917  ;;  %v1146_v44 = vld [vmem:[#allocation4] sm:$0xff] }
 0x4f9   : > { %v920_v22 = vmul.f32 %v918_v18, %v914_v17 }
 0x4fc   : > { %v1521_v9 = vpop.eup %1520  ;;  %v1086_v26 = vpop.permute.xlu1 %1085 }
 0x4fd   : > { %1160 = vperm.xlu1 %1500, %v1521_v9   ;;  %v1088_v28 = vmul.f32 %v1086_v26, %v1082_v2 }
 0x4fe   : > { %v1176_v11 = vld [vmem:[#allocation3 + $0x18] sm:$0xff] }
 0x4ff   : > { %1524 = vrcp.f32 %v1176_v11 }
 0x504   : > { %v1523_v42 = vpop.eup %1522 }
 0x505   : > { %1171 = vperm.xlu0 %1501, %v1523_v42  }
 0x50c   : > { %v1525_v43 = vpop.eup %1524 }
 0x50d   : > { %1182 = vperm.xlu1 %1500, %v1525_v43  }
 0x520   : > { %v796_v14 = vpop.f32.mrf.mxu0 }
 0x521   : > { %v802_v15 = vadd.f32 %v796_v14, %v751_v13 }
 0x522   : > { %v1435_v16 = vpop.f32.mrf.mxu0 }
 0x523   : > { %803 = vst.msk [vmem:[#allocation4 + $0x8] sm:$0xff] %vm450_vm0, %v802_v15 }
 0x524   : > { %v799_v19 = vpop.f32.mrf.mxu0 }
 0x526   : > { %v1436_v21 = vpop.f32.mrf.mxu0 }
 0x528   : > { %v964_v23 = vpop.f32.mrf.mxu0 }
 0x529   : > { %v970_v24 = vadd.f32 %v964_v23, %v920_v22  ;;  %v1150_v12 = vpop.permute.xlu0 %1149 }
 0x52a   : > { %v1447_v25 = vpop.f32.mrf.mxu0  ;;  %v1157_v6 = vld [vmem:[#allocation4 + $0x8] sm:$0xff]  ;;  %v1152_v46 = vmul.f32 %v1150_v12, %v1146_v44 }
 0x52b   : > { %971 = vst.msk [vmem:[#allocation4 + $0x10] sm:$0xff] %vm450_vm0, %v970_v24 }
 0x52c   : > { %v967_v20 = vpop.f32.mrf.mxu0 }
 0x52e   : > { %v1448_v27 = vpop.f32.mrf.mxu0 }
 0x530   : > { %v1132_v29 = vpop.f32.mrf.mxu0 }
 0x531   : > { %v1138_v30 = vadd.f32 %v1132_v29, %v1088_v28 }
 0x532   : > { %v1459_v31 = vpop.f32.mrf.mxu0  ;;  %v1168_v36 = vld [vmem:[#allocation4 + $0x10] sm:$0xff] }
 0x533   : > { %1139 = vst.msk [vmem:[#allocation4 + $0x18] sm:$0xff] %vm450_vm0, %v1138_v30 }
 0x534   : > { %v1135_v32 = vpop.f32.mrf.mxu0 }
 0x536   : > { %v1460_v33 = vpop.f32.mrf.mxu0 }
 0x53a   : > { %v1179_v40 = vld [vmem:[#allocation4 + $0x18] sm:$0xff] }
 0x578   : > { %v1161_v34 = vpop.permute.xlu1 %1160 }
 0x579   : > { %v1163_v10 = vmul.f32 %v1161_v34, %v1157_v6 }
 0x57b   : > { %1187 = vrot.lane.b32.xlu0 %v1163_v10, %s1557_s19 }
 0x580   : > { %v1172_v35 = vpop.permute.xlu0 %1171 }
 0x581   : > { %v1174_v37 = vmul.f32 %v1172_v35, %v1168_v36 }
 0x583   : > { %1191 = vrot.lane.b32.xlu1 %v1174_v37, %s1558_s30 }
 0x588   : > { %v1183_v38 = vpop.permute.xlu1 %1182 }
 0x589   : > { %v1185_v41 = vmul.f32 %v1183_v38, %v1179_v40 }
 0x58b   : > { %1195 = vrot.lane.b32.xlu0 %v1185_v41, %s1559_s8 }
 0x5ed   : > { %v1188_v45 = vpop.permute.xlu0 %1187 }
 0x5ee   : > { %v1199_v47 = vsel %vm450_vm0, %v1152_v46, %v1188_v45 }
 0x5f5   : > { %v1192_v0 = vpop.permute.xlu1 %1191 }
 0x5f6   : > { %v1201_v48 = vsel %vm1200_vm6, %v1199_v47, %v1192_v0 }
 0x5fd   : > { %v1196_v49 = vpop.permute.xlu0 %1195 }
 0x5fe   : > { %v1203_v50 = vsel %vm1202_vm7, %v1201_v48, %v1196_v49 }
 0x5ff   : > { %1205 = vst.msk [vmem:[%s435_s17] sm:$0xff] %vm1204_vm8, %v1203_v50 }
 0x600 PF: > { %s17_s26 = sadd.s32 1, %s1548_s26   ;;  %s1849_s24 = smov %s1544_s25 }
 0x601   : > { %p14_p5 = scmp.ge.s32.totalorder %s17_s26, 4   ;;  %s1850_s25 = smov %s1852_s27 }
 0x603   :  { %16 = sbr.rel (!%p14_p5) target bundleno = 2 (0x2), region = 123 }

</bundles_post_ra>
